<compile_context>
chip_gen: v6e
topology: v6e:2x2x1
jax: 0.10.0
libtpu: 0.0.40
codegen_flags: <defaults>
</compile_context>

<pallas_src>
import jax
import jax.numpy as jnp
from jax.experimental import pallas as pl
from jax.experimental.pallas import tpu as pltpu

_H = 64        # LSTM hidden size
_HP = 128      # lane-padded per-gate width
_NC_PAD = 128  # lane-dense padded classifier width


# ---------------------------------------------------------------------------
# Kernel
# ---------------------------------------------------------------------------
def cnn_lstm_kernel(x_ref, c1w_ref, c2w_ref, w_ref, b_ref, out_ref,
                    gx_scr, h0_scr):
    # x_ref: (L, B_TILE, 3F) time-major im2col of the raw input (f32).
    L, Bt, F3 = x_ref.shape
    HP = _HP
    G4 = 4 * HP

    # ---- resident packed weights (bf16), static 128-aligned lane slices -----
    wih0 = w_ref[:, 0 * G4:1 * G4]            # (128, 512)
    whh0 = w_ref[:, 1 * G4:2 * G4]            # (128, 512)
    wih1 = w_ref[:, 2 * G4:3 * G4]            # (128, 512)
    whh1 = w_ref[:, 3 * G4:4 * G4]            # (128, 512)
    fc1w = w_ref[:, 4 * G4:4 * G4 + HP]       # (128, 128)
    fc2w = w_ref[:, 4 * G4 + HP:4 * G4 + 2 * HP]   # (128, 128)

    # ---- packed biases (f32), all offsets multiples of 128 ------------------
    b0 = b_ref[:, 0:G4]                        # (1, 512)
    b1 = b_ref[:, G4:2 * G4]                   # (1, 512)
    c2b = b_ref[:, 2 * G4:2 * G4 + 128]        # (1, 128)
    fc1b = b_ref[:, 2 * G4 + 128:2 * G4 + 256]  # (1, 128)
    fc2b = b_ref[:, 2 * G4 + 256:2 * G4 + 384]  # (1, 128)
    c1b = b_ref[:, 2 * G4 + 384:2 * G4 + 448]   # (1, 64)

    def mm(a_f32, w_bf16):
        # bf16 MXU operands, f32 accumulation.
        return jnp.dot(a_f32.astype(jnp.bfloat16), w_bf16,
                       preferred_element_type=jnp.float32)

    def maxpool2_time(h):
        # MaxPool1d(kernel_size=2, stride=2) over the leading (untiled) time axis:
        # pure leading-dim regroup + static index -> no sublane relayout.
        T = h.shape[0]
        hp = h.reshape(T // 2, 2, h.shape[1], h.shape[2])
        return jnp.maximum(hp[:, 0], hp[:, 1])

    # ---- conv1 (im2col prebuilt in the wrapper): one matmul over B_TILE*L rows
    x2d = x_ref[...].astype(jnp.float32).reshape(L * Bt, F3)
    h = jnp.maximum(mm(x2d, c1w_ref[...]) + c1b, 0.0).reshape(L, Bt, 64)

    # ---- maxpool 1 -----------------------------------------------------------
    h = maxpool2_time(h)                                         # (L/2, Bt, 64)
    T2 = h.shape[0]

    # ---- conv2: time-major taps (boundary zeros shared by the whole batch tile),
    #      im2col lane-concat, single MXU matmul ------------------------------
    z = jnp.zeros((1, Bt, 64), jnp.float32)
    xcat = jnp.concatenate(
        [jnp.concatenate([z, h[:T2 - 1]], axis=0),               # x[t-1]
         h,                                                      # x[t]
         jnp.concatenate([h[1:], z], axis=0)],                   # x[t+1]
        axis=2)                                                  # (T2, Bt, 192)
    h = jnp.maximum(mm(xcat.reshape(T2 * Bt, 3 * 64), c2w_ref[...]) + c2b,
                    0.0).reshape(T2, Bt, 128)

    # ---- maxpool 2 -----------------------------------------------------------
    h = maxpool2_time(h)                                         # (Tl, Bt, 128)
    Tl = h.shape[0]

    # ---- LSTM gate / state math (lane-aligned 128-wide gates; pad cols stay 0)
    def gates(g, cs):
        i = jax.nn.sigmoid(g[:, 0 * HP:1 * HP])
        f = jax.nn.sigmoid(g[:, 1 * HP:2 * HP])
        gg = jnp.tanh(g[:, 2 * HP:3 * HP])
        o = jax.nn.sigmoid(g[:, 3 * HP:4 * HP])
        cs = f * cs + i * gg
        hs = o * jnp.tanh(cs)
        return hs, cs

    zeros_bh = jnp.zeros((Bt, HP), jnp.float32)
    unroll = Tl <= 8

    # ---- LSTM layer 0: hoisted input projection, then batched recurrence ----
    gx_scr[...] = mm(h.reshape(Tl * Bt, 128), wih0) + b0          # (Tl*Bt, 512)

    def step0(t, carry):
        hs, cs = carry
        r = pl.multiple_of(t * Bt, Bt)
        g = gx_scr[pl.ds(r, Bt), :] + mm(hs, whh0)                # (Bt, 512)
        hs, cs = gates(g, cs)
        h0_scr[pl.ds(r, Bt), :] = hs                              # store h_t
        return hs, cs

    jax.lax.fori_loop(0, Tl, step0, (zeros_bh, zeros_bh), unroll=unroll)

    # ---- LSTM layer 1 (reuses gx scratch; only the last hidden state needed) -
    gx_scr[...] = mm(h0_scr[...], wih1) + b1                      # (Tl*Bt, 512)

    def step1(t, carry):
        hs, cs = carry
        r = pl.multiple_of(t * Bt, Bt)
        g = gx_scr[pl.ds(r, Bt), :] + mm(hs, whh1)
        return gates(g, cs)

    hs1, _ = jax.lax.fori_loop(0, Tl, step1, (zeros_bh, zeros_bh), unroll=unroll)

    # ---- FC head on the last timestep -----------------------------------------
    # TODO(synk): Dropout(0.3) is identity in eval/inference; training-mode RNG dropout not implemented.
    zf = jnp.maximum(mm(hs1, fc1w) + fc1b, 0.0)                   # (Bt, 128)
    out_ref[...] = mm(zf, fc2w) + fc2b                            # (Bt, 128)


# ---------------------------------------------------------------------------
# Wrapper
# ---------------------------------------------------------------------------
def _pick_b_tile(B):
    # Multiple-of-8 batch tile, capped at 128; aim for >=2 grid programs once the
    # batch is big enough to split (v7x has 2 TensorCores).
    if B <= 8:
        return 8
    if B >= 256:
        return 128
    half = -(-B // 2)
    return min(128, -(-half // 8) * 8)


def _pad_gate_cols(w_t, H, HP):
    # w_t: (K, 4H) -> (K, 4*HP); gate g's real columns land at [g*HP, g*HP + H).
    K = w_t.shape[0]
    out = jnp.zeros((K, 4, HP), w_t.dtype).at[:, :, :H].set(w_t.reshape(K, 4, H))
    return out.reshape(K, 4 * HP)


def _pad_rows(w, KP):
    return jnp.zeros((KP, w.shape[1]), w.dtype).at[:w.shape[0]].set(w)


def _pad_gate_bias(b, H, HP):
    out = jnp.zeros((4, HP), jnp.float32).at[:, :H].set(b.reshape(4, H))
    return out.reshape(1, 4 * HP)


def cnn_lstm_forward(x, params):
    B, L, F = x.shape
    assert L % 4 == 0, "two stride-2 max-pools require L % 4 == 0"
    n_classes = params["fc2_w"].shape[0]
    f32, bf16 = jnp.float32, jnp.bfloat16
    H, HP = _H, _HP

    B_TILE = _pick_b_tile(B)
    grid_b = pl.cdiv(B, B_TILE)
    B_pad = grid_b * B_TILE
    Tl = L // 4

    # ---- conv1 im2col built host/XLA-side (x is tiny), time-major + batch pad --
    xf = x.astype(f32)
    zrow = jnp.zeros((B, 1, F), f32)
    xcat = jnp.concatenate(
        [jnp.concatenate([zrow, xf[:, :L - 1]], axis=1),   # x[t-1]
         xf,                                               # x[t]
         jnp.concatenate([xf[:, 1:], zrow], axis=1)],      # x[t+1]
        axis=2)                                            # (B, L, 3F)
    xcat_p = jnp.zeros((B_pad, L, 3 * F), f32).at[:B].set(xcat)
    x_tm = jnp.transpose(xcat_p, (1, 0, 2))                # (L, B_pad, 3F)

    # ---- conv weights stacked for im2col matmuls -------------------------------
    c1w = jnp.transpose(params["conv1_w"], (2, 1, 0)).reshape(3 * F, 64).astype(bf16)
    c2w = jnp.transpose(params["conv2_w"], (2, 1, 0)).reshape(3 * 64, 128).astype(bf16)

    # ---- LSTM / FC weights: gate-lane padding, row padding to 128, one packed array
    wih0 = _pad_gate_cols(params["w_ih_l0"].T, H, HP)                       # (128, 512)
    whh0 = _pad_rows(_pad_gate_cols(params["w_hh_l0"].T, H, HP), HP)        # (128, 512)
    wih1 = _pad_rows(_pad_gate_cols(params["w_ih_l1"].T, H, HP), HP)        # (128, 512)
    whh1 = _pad_rows(_pad_gate_cols(params["w_hh_l1"].T, H, HP), HP)        # (128, 512)
    fc1w = _pad_rows(params["fc1_w"].T, HP)                                  # (128, 128)
    fc2w = jnp.zeros((HP, _NC_PAD), f32).at[:, :n_classes].set(params["fc2_w"].T)
    w_all = jnp.concatenate([wih0, whh0, wih1, whh1, fc1w, fc2w],
                            axis=1).astype(bf16)                             # (128, 2304)

    # ---- biases packed into one f32 row (all slice offsets are 128-multiples) --
    b0 = _pad_gate_bias(params["b_ih_l0"] + params["b_hh_l0"], H, HP)        # (1, 512)
    b1 = _pad_gate_bias(params["b_ih_l1"] + params["b_hh_l1"], H, HP)        # (1, 512)
    c2b = params["conv2_b"].reshape(1, 128).astype(f32)
    fc1b = params["fc1_b"].reshape(1, 128).astype(f32)
    fc2b = jnp.zeros((1, _NC_PAD), f32).at[:, :n_classes].set(params["fc2_b"])
    c1b = params["conv1_b"].reshape(1, 64).astype(f32)
    b_all = jnp.concatenate([b0, b1, c2b, fc1b, fc2b, c1b], axis=1)          # (1, 1472)

    def const_spec(a):
        zeros = (0,) * a.ndim
        return pl.BlockSpec(a.shape, lambda b, _z=zeros: _z)   # resident weights

    in_specs = [
        pl.BlockSpec((L, B_TILE, 3 * F), lambda b: (0, b, 0)),  # per-tile input block
        const_spec(c1w), const_spec(c2w), const_spec(w_all), const_spec(b_all),
    ]

    out = pl.pallas_call(
        cnn_lstm_kernel,
        out_shape=jax.ShapeDtypeStruct((B_pad, _NC_PAD), jnp.float32),
        grid=(grid_b,),
        in_specs=in_specs,
        out_specs=pl.BlockSpec((B_TILE, _NC_PAD), lambda b: (b, 0)),
        scratch_shapes=[
            pltpu.VMEM((Tl * B_TILE, 4 * HP), jnp.float32),   # hoisted gate projections
            pltpu.VMEM((Tl * B_TILE, HP), jnp.float32),       # layer-0 hidden sequence
        ],
        compiler_params=pltpu.CompilerParams(
            dimension_semantics=("parallel",),
            vmem_limit_bytes=32 << 20),
    )(x_tm, c1w, c2w, w_all, b_all)
    return out[:B, :n_classes]


# ---------------------------------------------------------------------------
# Pure-JAX f32 reference (mirrors the PyTorch module) + params
# ---------------------------------------------------------------------------
def reference_forward(x, params):
    f32 = jnp.float32
    B, L, F = x.shape
    H = _H

    def conv1d(inp, w, b):
        Bb, T, Cin = inp.shape
        z = jnp.zeros((Bb, 1, Cin), f32)
        xp = jnp.concatenate([z, inp, z], axis=1)
        out = jnp.zeros((Bb, T, w.shape[0]), f32)
        for k in range(3):
            out = out + jnp.einsum("btc,oc->bto", xp[:, k:k + T, :], w[:, :, k])
        return out + b

    def pool(inp):
        return jnp.maximum(inp[:, 0::2], inp[:, 1::2])

    def lstm_layer(seq, w_ih, w_hh, b_ih, b_hh):
        Bb, T, _ = seq.shape
        hs = jnp.zeros((Bb, H), f32)
        cs = jnp.zeros((Bb, H), f32)
        outs = []
        for t in range(T):
            g = seq[:, t] @ w_ih.T + hs @ w_hh.T + b_ih + b_hh
            i = jax.nn.sigmoid(g[:, :H])
            f = jax.nn.sigmoid(g[:, H:2 * H])
            gg = jnp.tanh(g[:, 2 * H:3 * H])
            o = jax.nn.sigmoid(g[:, 3 * H:])
            cs = f * cs + i * gg
            hs = o * jnp.tanh(cs)
            outs.append(hs)
        return jnp.stack(outs, axis=1), hs

    h = jnp.maximum(conv1d(x.astype(f32), params["conv1_w"], params["conv1_b"]), 0.0)
    h = pool(h)
    h = jnp.maximum(conv1d(h, params["conv2_w"], params["conv2_b"]), 0.0)
    h = pool(h)
    h, _ = lstm_layer(h, params["w_ih_l0"], params["w_hh_l0"],
                      params["b_ih_l0"], params["b_hh_l0"])
    _, hl = lstm_layer(h, params["w_ih_l1"], params["w_hh_l1"],
                       params["b_ih_l1"], params["b_hh_l1"])
    z = jnp.maximum(hl @ params["fc1_w"].T + params["fc1_b"], 0.0)
    return z @ params["fc2_w"].T + params["fc2_b"]


def init_params(key, n_features, n_classes):
    ks = jax.random.split(key, 16)

    def nrm(k, shape, scale=0.1):
        return scale * jax.random.normal(k, shape, dtype=jnp.float32)

    H = _H
    return {
        "conv1_w": nrm(ks[0], (64, n_features, 3)),
        "conv1_b": nrm(ks[1], (64,)),
        "conv2_w": nrm(ks[2], (128, 64, 3)),
        "conv2_b": nrm(ks[3], (128,)),
        "w_ih_l0": nrm(ks[4], (4 * H, 128)),
        "w_hh_l0": nrm(ks[5], (4 * H, H)),
        "b_ih_l0": nrm(ks[6], (4 * H,)),
        "b_hh_l0": nrm(ks[7], (4 * H,)),
        "w_ih_l1": nrm(ks[8], (4 * H, H)),
        "w_hh_l1": nrm(ks[9], (4 * H, H)),
        "b_ih_l1": nrm(ks[10], (4 * H,)),
        "b_hh_l1": nrm(ks[11], (4 * H,)),
        "fc1_w": nrm(ks[12], (128, H)),
        "fc1_b": nrm(ks[13], (128,)),
        "fc2_w": nrm(ks[14], (n_classes, 128)),
        "fc2_b": nrm(ks[15], (n_classes,)),
    }


if __name__ == "__main__":
    B, L, F, C = 2, 16, 8, 5          # batch, seq_len, n_features, n_classes
    key = jax.random.PRNGKey(0)
    kx, kp = jax.random.split(key)
    x = jax.random.normal(kx, (B, L, F), dtype=jnp.float32)   # (B, seq, features)
    params = init_params(kp, F, C)

    out = jax.jit(cnn_lstm_forward)(x, params)
    out = jax.block_until_ready(out)

    assert out.shape == (B, C), out.shape
    assert bool(jnp.all(jnp.isfinite(out)))

    ref = reference_forward(x, params)                         # f32 reference
    err = float(jnp.max(jnp.abs(out - ref)))
    assert err < 5e-2, f"max |kernel - f32 ref| = {err}"       # loose: bf16 MXU operands

    print("KERNEL_OK")
</pallas_src>

<mosaic_0001>
module attributes {stable_mosaic.version = 11 : i64} {
  func.func @cnn_lstm_kernel(%arg0: i32, %arg1: memref<16x8x24xf32, #tpu.memory_space<vmem>>, %arg2: memref<24x64xbf16, #tpu.memory_space<vmem>>, %arg3: memref<192x128xbf16, #tpu.memory_space<vmem>>, %arg4: memref<128x2304xbf16, #tpu.memory_space<vmem>>, %arg5: memref<1x1472xf32, #tpu.memory_space<vmem>>, %arg6: memref<8x128xf32, #tpu.memory_space<vmem>>, %arg7: memref<32x512xf32, #tpu.memory_space<vmem>>, %arg8: memref<32x128xf32, #tpu.memory_space<vmem>>) attributes {dimension_semantics = [#tpu.dimension_semantics<parallel>], iteration_bounds = array<i64: 1>, scalar_prefetch = 0 : i64, scratch_operands = 2 : i64, tpu.core_type = #tpu.core_type<tc>, window_params = [{transform_indices = @transform_0, window_bounds = array<i64: 16, 8, 24>}, {pipeline_mode = #tpu.pipeline_mode<synchronous>, transform_indices = @transform_1, window_bounds = array<i64: 24, 64>}, {pipeline_mode = #tpu.pipeline_mode<synchronous>, transform_indices = @transform_2, window_bounds = array<i64: 192, 128>}, {pipeline_mode = #tpu.pipeline_mode<synchronous>, transform_indices = @transform_3, window_bounds = array<i64: 128, 2304>}, {pipeline_mode = #tpu.pipeline_mode<synchronous>, transform_indices = @transform_4, window_bounds = array<i64: 1, 1472>}, {transform_indices = @transform_5, window_bounds = array<i64: 8, 128>}]} {
    %c0 = arith.constant 0 : index
    %c0_0 = arith.constant 0 : index
    %0 = vector.load %arg4[%c0, %c0_0] : memref<128x2304xbf16, #tpu.memory_space<vmem>>, vector<128x512xbf16>
    %c0_1 = arith.constant 0 : index
    %c512 = arith.constant 512 : index
    %1 = vector.load %arg4[%c0_1, %c512] : memref<128x2304xbf16, #tpu.memory_space<vmem>>, vector<128x512xbf16>
    %c0_2 = arith.constant 0 : index
    %c1024 = arith.constant 1024 : index
    %2 = vector.load %arg4[%c0_2, %c1024] : memref<128x2304xbf16, #tpu.memory_space<vmem>>, vector<128x512xbf16>
    %c0_3 = arith.constant 0 : index
    %c1536 = arith.constant 1536 : index
    %3 = vector.load %arg4[%c0_3, %c1536] : memref<128x2304xbf16, #tpu.memory_space<vmem>>, vector<128x512xbf16>
    %c0_4 = arith.constant 0 : index
    %c2048 = arith.constant 2048 : index
    %4 = vector.load %arg4[%c0_4, %c2048] : memref<128x2304xbf16, #tpu.memory_space<vmem>>, vector<128x128xbf16>
    %c0_5 = arith.constant 0 : index
    %c2176 = arith.constant 2176 : index
    %5 = vector.load %arg4[%c0_5, %c2176] : memref<128x2304xbf16, #tpu.memory_space<vmem>>, vector<128x128xbf16>
    %c0_6 = arith.constant 0 : index
    %c0_7 = arith.constant 0 : index
    %6 = vector.load %arg5[%c0_6, %c0_7] : memref<1x1472xf32, #tpu.memory_space<vmem>>, vector<1x512xf32>
    %c0_8 = arith.constant 0 : index
    %c512_9 = arith.constant 512 : index
    %7 = vector.load %arg5[%c0_8, %c512_9] : memref<1x1472xf32, #tpu.memory_space<vmem>>, vector<1x512xf32>
    %c0_10 = arith.constant 0 : index
    %c1024_11 = arith.constant 1024 : index
    %8 = vector.load %arg5[%c0_10, %c1024_11] : memref<1x1472xf32, #tpu.memory_space<vmem>>, vector<1x128xf32>
    %c0_12 = arith.constant 0 : index
    %c1152 = arith.constant 1152 : index
    %9 = vector.load %arg5[%c0_12, %c1152] : memref<1x1472xf32, #tpu.memory_space<vmem>>, vector<1x128xf32>
    %c0_13 = arith.constant 0 : index
    %c1280 = arith.constant 1280 : index
    %10 = vector.load %arg5[%c0_13, %c1280] : memref<1x1472xf32, #tpu.memory_space<vmem>>, vector<1x128xf32>
    %c0_14 = arith.constant 0 : index
    %c1408 = arith.constant 1408 : index
    %11 = vector.load %arg5[%c0_14, %c1408] : memref<1x1472xf32, #tpu.memory_space<vmem>>, vector<1x64xf32>
    %c0_15 = arith.constant 0 : index
    %c0_16 = arith.constant 0 : index
    %c0_17 = arith.constant 0 : index
    %12 = vector.load %arg1[%c0_15, %c0_16, %c0_17] : memref<16x8x24xf32, #tpu.memory_space<vmem>>, vector<16x8x24xf32>
    %13 = vector.shape_cast %12 : vector<16x8x24xf32> to vector<128x24xf32>
    %c0_18 = arith.constant 0 : index
    %c0_19 = arith.constant 0 : index
    %14 = vector.load %arg2[%c0_18, %c0_19] : memref<24x64xbf16, #tpu.memory_space<vmem>>, vector<24x64xbf16>
    %15 = arith.truncf %13 : vector<128x24xf32> to vector<128x24xbf16>
    %cst = arith.constant dense<0.000000e+00> : vector<128x64xf32>
    %16 = tpu.matmul %15, %14, %cst {dimension_numbers = #tpu.dot_dimension_numbers<[1], [0], [0], [1], [0, 0, 1, 1], [], []>} : vector<128x24xbf16>, vector<24x64xbf16>, vector<128x64xf32> -> vector<128x64xf32>
    %17 = vector.broadcast %11 : vector<1x64xf32> to vector<128x64xf32>
    %18 = arith.addf %16, %17 : vector<128x64xf32>
    %cst_20 = arith.constant 0.000000e+00 : f32
    %19 = vector.broadcast %cst_20 : f32 to vector<128x64xf32>
    %20 = arith.maximumf %18, %19 : vector<128x64xf32>
    %21 = vector.shape_cast %20 : vector<128x64xf32> to vector<16x8x64xf32>
    %22 = vector.shape_cast %21 : vector<16x8x64xf32> to vector<8x2x8x64xf32>
    %23 = vector.extract_strided_slice %22 {offsets = [0, 0, 0, 0], sizes = [8, 1, 8, 64], strides = [1, 1, 1, 1]} : vector<8x2x8x64xf32> to vector<8x1x8x64xf32>
    %24 = vector.shape_cast %23 : vector<8x1x8x64xf32> to vector<8x8x64xf32>
    %25 = vector.extract_strided_slice %22 {offsets = [0, 1, 0, 0], sizes = [8, 1, 8, 64], strides = [1, 1, 1, 1]} : vector<8x2x8x64xf32> to vector<8x1x8x64xf32>
    %26 = vector.shape_cast %25 : vector<8x1x8x64xf32> to vector<8x8x64xf32>
    %27 = arith.maximumf %24, %26 : vector<8x8x64xf32>
    %cst_21 = arith.constant 0.000000e+00 : f32
    %28 = vector.broadcast %cst_21 : f32 to vector<1x8x64xf32>
    %29 = vector.extract_strided_slice %27 {offsets = [0, 0, 0], sizes = [7, 8, 64], strides = [1, 1, 1]} : vector<8x8x64xf32> to vector<7x8x64xf32>
    %30 = tpu.concatenate %28, %29 in 0 : vector<1x8x64xf32>, vector<7x8x64xf32> -> vector<8x8x64xf32>
    %31 = vector.extract_strided_slice %27 {offsets = [1, 0, 0], sizes = [7, 8, 64], strides = [1, 1, 1]} : vector<8x8x64xf32> to vector<7x8x64xf32>
    %32 = tpu.concatenate %31, %28 in 0 : vector<7x8x64xf32>, vector<1x8x64xf32> -> vector<8x8x64xf32>
    %33 = tpu.concatenate %30, %27, %32 in 2 : vector<8x8x64xf32>, vector<8x8x64xf32>, vector<8x8x64xf32> -> vector<8x8x192xf32>
    %34 = vector.shape_cast %33 : vector<8x8x192xf32> to vector<64x192xf32>
    %c0_22 = arith.constant 0 : index
    %c0_23 = arith.constant 0 : index
    %35 = vector.load %arg3[%c0_22, %c0_23] : memref<192x128xbf16, #tpu.memory_space<vmem>>, vector<192x128xbf16>
    %36 = arith.truncf %34 : vector<64x192xf32> to vector<64x192xbf16>
    %cst_24 = arith.constant dense<0.000000e+00> : vector<64x128xf32>
    %37 = tpu.matmul %36, %35, %cst_24 {dimension_numbers = #tpu.dot_dimension_numbers<[1], [0], [0], [1], [0, 0, 1, 1], [], []>} : vector<64x192xbf16>, vector<192x128xbf16>, vector<64x128xf32> -> vector<64x128xf32>
    %38 = vector.broadcast %8 : vector<1x128xf32> to vector<64x128xf32>
    %39 = arith.addf %37, %38 : vector<64x128xf32>
    %cst_25 = arith.constant 0.000000e+00 : f32
    %40 = vector.broadcast %cst_25 : f32 to vector<64x128xf32>
    %41 = arith.maximumf %39, %40 : vector<64x128xf32>
    %42 = vector.shape_cast %41 : vector<64x128xf32> to vector<8x8x128xf32>
    %43 = vector.shape_cast %42 : vector<8x8x128xf32> to vector<4x2x8x128xf32>
    %44 = vector.extract_strided_slice %43 {offsets = [0, 0, 0, 0], sizes = [4, 1, 8, 128], strides = [1, 1, 1, 1]} : vector<4x2x8x128xf32> to vector<4x1x8x128xf32>
    %45 = vector.shape_cast %44 : vector<4x1x8x128xf32> to vector<4x8x128xf32>
    %46 = vector.extract_strided_slice %43 {offsets = [0, 1, 0, 0], sizes = [4, 1, 8, 128], strides = [1, 1, 1, 1]} : vector<4x2x8x128xf32> to vector<4x1x8x128xf32>
    %47 = vector.shape_cast %46 : vector<4x1x8x128xf32> to vector<4x8x128xf32>
    %48 = arith.maximumf %45, %47 : vector<4x8x128xf32>
    %cst_26 = arith.constant 0.000000e+00 : f32
    %49 = vector.broadcast %cst_26 : f32 to vector<8x128xf32>
    %50 = vector.shape_cast %48 : vector<4x8x128xf32> to vector<32x128xf32>
    %51 = arith.truncf %50 : vector<32x128xf32> to vector<32x128xbf16>
    %cst_27 = arith.constant dense<0.000000e+00> : vector<32x512xf32>
    %52 = tpu.matmul %51, %0, %cst_27 {dimension_numbers = #tpu.dot_dimension_numbers<[1], [0], [0], [1], [0, 0, 1, 1], [], []>} : vector<32x128xbf16>, vector<128x512xbf16>, vector<32x512xf32> -> vector<32x512xf32>
    %53 = vector.broadcast %6 : vector<1x512xf32> to vector<32x512xf32>
    %54 = arith.addf %52, %53 : vector<32x512xf32>
    %c0_28 = arith.constant 0 : index
    %c0_29 = arith.constant 0 : index
    %55 = vector.load %arg7[%c0_28, %c0_29] : memref<32x512xf32, #tpu.memory_space<vmem>>, vector<32x512xf32>
    tpu.vector_store %arg7[%c0_28, %c0_29], %54 {strides = array<i32>} : memref<32x512xf32, #tpu.memory_space<vmem>>, vector<32x512xf32>,
    %c0_i32 = arith.constant 0 : i32
    %c8_i32 = arith.constant 8 : i32
    %56 = arith.muli %c0_i32, %c8_i32 : i32
    %57 = tpu.assume_multiple %56, 8 : i32
    %58 = arith.index_cast %57 : i32 to index
    %c0_30 = arith.constant 0 : index
    %59 = vector.load %arg7[%58, %c0_30] : memref<32x512xf32, #tpu.memory_space<vmem>>, vector<8x512xf32>
    %60 = arith.truncf %49 : vector<8x128xf32> to vector<8x128xbf16>
    %cst_31 = arith.constant dense<0.000000e+00> : vector<8x512xf32>
    %61 = tpu.matmul %60, %1, %cst_31 {dimension_numbers = #tpu.dot_dimension_numbers<[1], [0], [0], [1], [0, 0, 1, 1], [], []>} : vector<8x128xbf16>, vector<128x512xbf16>, vector<8x512xf32> -> vector<8x512xf32>
    %62 = arith.addf %59, %61 : vector<8x512xf32>
    %63 = vector.extract_strided_slice %62 {offsets = [0, 0], sizes = [8, 128], strides = [1, 1]} : vector<8x512xf32> to vector<8x128xf32>
    %64 = arith.negf %63 : vector<8x128xf32>
    %65 = math.exp %64 : vector<8x128xf32>
    %cst_32 = arith.constant 1.000000e+00 : f32
    %66 = vector.broadcast %cst_32 : f32 to vector<8x128xf32>
    %67 = arith.addf %66, %65 : vector<8x128xf32>
    %68 = arith.divf %66, %67 : vector<8x128xf32>
    %69 = vector.extract_strided_slice %62 {offsets = [0, 128], sizes = [8, 128], strides = [1, 1]} : vector<8x512xf32> to vector<8x128xf32>
    %70 = arith.negf %69 : vector<8x128xf32>
    %71 = math.exp %70 : vector<8x128xf32>
    %cst_33 = arith.constant 1.000000e+00 : f32
    %72 = vector.broadcast %cst_33 : f32 to vector<8x128xf32>
    %73 = arith.addf %72, %71 : vector<8x128xf32>
    %74 = arith.divf %72, %73 : vector<8x128xf32>
    %75 = vector.extract_strided_slice %62 {offsets = [0, 256], sizes = [8, 128], strides = [1, 1]} : vector<8x512xf32> to vector<8x128xf32>
    %76 = math.tanh %75 : vector<8x128xf32>
    %77 = vector.extract_strided_slice %62 {offsets = [0, 384], sizes = [8, 128], strides = [1, 1]} : vector<8x512xf32> to vector<8x128xf32>
    %78 = arith.negf %77 : vector<8x128xf32>
    %79 = math.exp %78 : vector<8x128xf32>
    %cst_34 = arith.constant 1.000000e+00 : f32
    %80 = vector.broadcast %cst_34 : f32 to vector<8x128xf32>
    %81 = arith.addf %80, %79 : vector<8x128xf32>
    %82 = arith.divf %80, %81 : vector<8x128xf32>
    %83 = arith.mulf %74, %49 : vector<8x128xf32>
    %84 = arith.mulf %68, %76 : vector<8x128xf32>
    %85 = arith.addf %83, %84 : vector<8x128xf32>
    %86 = math.tanh %85 : vector<8x128xf32>
    %87 = arith.mulf %82, %86 : vector<8x128xf32>
    %88 = arith.index_cast %57 : i32 to index
    %c0_35 = arith.constant 0 : index
    %89 = vector.load %arg8[%88, %c0_35] : memref<32x128xf32, #tpu.memory_space<vmem>>, vector<8x128xf32>
    tpu.vector_store %arg8[%88, %c0_35], %87 {strides = array<i32>} : memref<32x128xf32, #tpu.memory_space<vmem>>, vector<8x128xf32>,
    %c1_i32 = arith.constant 1 : i32
    %c8_i32_36 = arith.constant 8 : i32
    %90 = arith.muli %c1_i32, %c8_i32_36 : i32
    %91 = tpu.assume_multiple %90, 8 : i32
    %92 = arith.index_cast %91 : i32 to index
    %c0_37 = arith.constant 0 : index
    %93 = vector.load %arg7[%92, %c0_37] : memref<32x512xf32, #tpu.memory_space<vmem>>, vector<8x512xf32>
    %94 = arith.truncf %87 : vector<8x128xf32> to vector<8x128xbf16>
    %cst_38 = arith.constant dense<0.000000e+00> : vector<8x512xf32>
    %95 = tpu.matmul %94, %1, %cst_38 {dimension_numbers = #tpu.dot_dimension_numbers<[1], [0], [0], [1], [0, 0, 1, 1], [], []>} : vector<8x128xbf16>, vector<128x512xbf16>, vector<8x512xf32> -> vector<8x512xf32>
    %96 = arith.addf %93, %95 : vector<8x512xf32>
    %97 = vector.extract_strided_slice %96 {offsets = [0, 0], sizes = [8, 128], strides = [1, 1]} : vector<8x512xf32> to vector<8x128xf32>
    %98 = arith.negf %97 : vector<8x128xf32>
    %99 = math.exp %98 : vector<8x128xf32>
    %cst_39 = arith.constant 1.000000e+00 : f32
    %100 = vector.broadcast %cst_39 : f32 to vector<8x128xf32>
    %101 = arith.addf %100, %99 : vector<8x128xf32>
    %102 = arith.divf %100, %101 : vector<8x128xf32>
    %103 = vector.extract_strided_slice %96 {offsets = [0, 128], sizes = [8, 128], strides = [1, 1]} : vector<8x512xf32> to vector<8x128xf32>
    %104 = arith.negf %103 : vector<8x128xf32>
    %105 = math.exp %104 : vector<8x128xf32>
    %cst_40 = arith.constant 1.000000e+00 : f32
    %106 = vector.broadcast %cst_40 : f32 to vector<8x128xf32>
    %107 = arith.addf %106, %105 : vector<8x128xf32>
    %108 = arith.divf %106, %107 : vector<8x128xf32>
    %109 = vector.extract_strided_slice %96 {offsets = [0, 256], sizes = [8, 128], strides = [1, 1]} : vector<8x512xf32> to vector<8x128xf32>
    %110 = math.tanh %109 : vector<8x128xf32>
    %111 = vector.extract_strided_slice %96 {offsets = [0, 384], sizes = [8, 128], strides = [1, 1]} : vector<8x512xf32> to vector<8x128xf32>
    %112 = arith.negf %111 : vector<8x128xf32>
    %113 = math.exp %112 : vector<8x128xf32>
    %cst_41 = arith.constant 1.000000e+00 : f32
    %114 = vector.broadcast %cst_41 : f32 to vector<8x128xf32>
    %115 = arith.addf %114, %113 : vector<8x128xf32>
    %116 = arith.divf %114, %115 : vector<8x128xf32>
    %117 = arith.mulf %108, %85 : vector<8x128xf32>
    %118 = arith.mulf %102, %110 : vector<8x128xf32>
    %119 = arith.addf %117, %118 : vector<8x128xf32>
    %120 = math.tanh %119 : vector<8x128xf32>
    %121 = arith.mulf %116, %120 : vector<8x128xf32>
    %122 = arith.index_cast %91 : i32 to index
    %c0_42 = arith.constant 0 : index
    %123 = vector.load %arg8[%122, %c0_42] : memref<32x128xf32, #tpu.memory_space<vmem>>, vector<8x128xf32>
    tpu.vector_store %arg8[%122, %c0_42], %121 {strides = array<i32>} : memref<32x128xf32, #tpu.memory_space<vmem>>, vector<8x128xf32>,
    %c2_i32 = arith.constant 2 : i32
    %c8_i32_43 = arith.constant 8 : i32
    %124 = arith.muli %c2_i32, %c8_i32_43 : i32
    %125 = tpu.assume_multiple %124, 8 : i32
    %126 = arith.index_cast %125 : i32 to index
    %c0_44 = arith.constant 0 : index
    %127 = vector.load %arg7[%126, %c0_44] : memref<32x512xf32, #tpu.memory_space<vmem>>, vector<8x512xf32>
    %128 = arith.truncf %121 : vector<8x128xf32> to vector<8x128xbf16>
    %cst_45 = arith.constant dense<0.000000e+00> : vector<8x512xf32>
    %129 = tpu.matmul %128, %1, %cst_45 {dimension_numbers = #tpu.dot_dimension_numbers<[1], [0], [0], [1], [0, 0, 1, 1], [], []>} : vector<8x128xbf16>, vector<128x512xbf16>, vector<8x512xf32> -> vector<8x512xf32>
    %130 = arith.addf %127, %129 : vector<8x512xf32>
    %131 = vector.extract_strided_slice %130 {offsets = [0, 0], sizes = [8, 128], strides = [1, 1]} : vector<8x512xf32> to vector<8x128xf32>
    %132 = arith.negf %131 : vector<8x128xf32>
    %133 = math.exp %132 : vector<8x128xf32>
    %cst_46 = arith.constant 1.000000e+00 : f32
    %134 = vector.broadcast %cst_46 : f32 to vector<8x128xf32>
    %135 = arith.addf %134, %133 : vector<8x128xf32>
    %136 = arith.divf %134, %135 : vector<8x128xf32>
    %137 = vector.extract_strided_slice %130 {offsets = [0, 128], sizes = [8, 128], strides = [1, 1]} : vector<8x512xf32> to vector<8x128xf32>
    %138 = arith.negf %137 : vector<8x128xf32>
    %139 = math.exp %138 : vector<8x128xf32>
    %cst_47 = arith.constant 1.000000e+00 : f32
    %140 = vector.broadcast %cst_47 : f32 to vector<8x128xf32>
    %141 = arith.addf %140, %139 : vector<8x128xf32>
    %142 = arith.divf %140, %141 : vector<8x128xf32>
    %143 = vector.extract_strided_slice %130 {offsets = [0, 256], sizes = [8, 128], strides = [1, 1]} : vector<8x512xf32> to vector<8x128xf32>
    %144 = math.tanh %143 : vector<8x128xf32>
    %145 = vector.extract_strided_slice %130 {offsets = [0, 384], sizes = [8, 128], strides = [1, 1]} : vector<8x512xf32> to vector<8x128xf32>
    %146 = arith.negf %145 : vector<8x128xf32>
    %147 = math.exp %146 : vector<8x128xf32>
    %cst_48 = arith.constant 1.000000e+00 : f32
    %148 = vector.broadcast %cst_48 : f32 to vector<8x128xf32>
    %149 = arith.addf %148, %147 : vector<8x128xf32>
    %150 = arith.divf %148, %149 : vector<8x128xf32>
    %151 = arith.mulf %142, %119 : vector<8x128xf32>
    %152 = arith.mulf %136, %144 : vector<8x128xf32>
    %153 = arith.addf %151, %152 : vector<8x128xf32>
    %154 = math.tanh %153 : vector<8x128xf32>
    %155 = arith.mulf %150, %154 : vector<8x128xf32>
    %156 = arith.index_cast %125 : i32 to index
    %c0_49 = arith.constant 0 : index
    %157 = vector.load %arg8[%156, %c0_49] : memref<32x128xf32, #tpu.memory_space<vmem>>, vector<8x128xf32>
    tpu.vector_store %arg8[%156, %c0_49], %155 {strides = array<i32>} : memref<32x128xf32, #tpu.memory_space<vmem>>, vector<8x128xf32>,
    %c3_i32 = arith.constant 3 : i32
    %c8_i32_50 = arith.constant 8 : i32
    %158 = arith.muli %c3_i32, %c8_i32_50 : i32
    %159 = tpu.assume_multiple %158, 8 : i32
    %160 = arith.index_cast %159 : i32 to index
    %c0_51 = arith.constant 0 : index
    %161 = vector.load %arg7[%160, %c0_51] : memref<32x512xf32, #tpu.memory_space<vmem>>, vector<8x512xf32>
    %162 = arith.truncf %155 : vector<8x128xf32> to vector<8x128xbf16>
    %cst_52 = arith.constant dense<0.000000e+00> : vector<8x512xf32>
    %163 = tpu.matmul %162, %1, %cst_52 {dimension_numbers = #tpu.dot_dimension_numbers<[1], [0], [0], [1], [0, 0, 1, 1], [], []>} : vector<8x128xbf16>, vector<128x512xbf16>, vector<8x512xf32> -> vector<8x512xf32>
    %164 = arith.addf %161, %163 : vector<8x512xf32>
    %165 = vector.extract_strided_slice %164 {offsets = [0, 0], sizes = [8, 128], strides = [1, 1]} : vector<8x512xf32> to vector<8x128xf32>
    %166 = arith.negf %165 : vector<8x128xf32>
    %167 = math.exp %166 : vector<8x128xf32>
    %cst_53 = arith.constant 1.000000e+00 : f32
    %168 = vector.broadcast %cst_53 : f32 to vector<8x128xf32>
    %169 = arith.addf %168, %167 : vector<8x128xf32>
    %170 = arith.divf %168, %169 : vector<8x128xf32>
    %171 = vector.extract_strided_slice %164 {offsets = [0, 128], sizes = [8, 128], strides = [1, 1]} : vector<8x512xf32> to vector<8x128xf32>
    %172 = arith.negf %171 : vector<8x128xf32>
    %173 = math.exp %172 : vector<8x128xf32>
    %cst_54 = arith.constant 1.000000e+00 : f32
    %174 = vector.broadcast %cst_54 : f32 to vector<8x128xf32>
    %175 = arith.addf %174, %173 : vector<8x128xf32>
    %176 = arith.divf %174, %175 : vector<8x128xf32>
    %177 = vector.extract_strided_slice %164 {offsets = [0, 256], sizes = [8, 128], strides = [1, 1]} : vector<8x512xf32> to vector<8x128xf32>
    %178 = math.tanh %177 : vector<8x128xf32>
    %179 = vector.extract_strided_slice %164 {offsets = [0, 384], sizes = [8, 128], strides = [1, 1]} : vector<8x512xf32> to vector<8x128xf32>
    %180 = arith.negf %179 : vector<8x128xf32>
    %181 = math.exp %180 : vector<8x128xf32>
    %cst_55 = arith.constant 1.000000e+00 : f32
    %182 = vector.broadcast %cst_55 : f32 to vector<8x128xf32>
    %183 = arith.addf %182, %181 : vector<8x128xf32>
    %184 = arith.divf %182, %183 : vector<8x128xf32>
    %185 = arith.mulf %176, %153 : vector<8x128xf32>
    %186 = arith.mulf %170, %178 : vector<8x128xf32>
    %187 = arith.addf %185, %186 : vector<8x128xf32>
    %188 = math.tanh %187 : vector<8x128xf32>
    %189 = arith.mulf %184, %188 : vector<8x128xf32>
    %190 = arith.index_cast %159 : i32 to index
    %c0_56 = arith.constant 0 : index
    %191 = vector.load %arg8[%190, %c0_56] : memref<32x128xf32, #tpu.memory_space<vmem>>, vector<8x128xf32>
    tpu.vector_store %arg8[%190, %c0_56], %189 {strides = array<i32>} : memref<32x128xf32, #tpu.memory_space<vmem>>, vector<8x128xf32>,
    %c4_i32 = arith.constant 4 : i32
    %c0_57 = arith.constant 0 : index
    %c0_58 = arith.constant 0 : index
    %192 = vector.load %arg8[%c0_57, %c0_58] : memref<32x128xf32, #tpu.memory_space<vmem>>, vector<32x128xf32>
    %193 = arith.truncf %192 : vector<32x128xf32> to vector<32x128xbf16>
    %cst_59 = arith.constant dense<0.000000e+00> : vector<32x512xf32>
    %194 = tpu.matmul %193, %2, %cst_59 {dimension_numbers = #tpu.dot_dimension_numbers<[1], [0], [0], [1], [0, 0, 1, 1], [], []>} : vector<32x128xbf16>, vector<128x512xbf16>, vector<32x512xf32> -> vector<32x512xf32>
    %195 = vector.broadcast %7 : vector<1x512xf32> to vector<32x512xf32>
    %196 = arith.addf %194, %195 : vector<32x512xf32>
    %c0_60 = arith.constant 0 : index
    %c0_61 = arith.constant 0 : index
    %197 = vector.load %arg7[%c0_60, %c0_61] : memref<32x512xf32, #tpu.memory_space<vmem>>, vector<32x512xf32>
    tpu.vector_store %arg7[%c0_60, %c0_61], %196 {strides = array<i32>} : memref<32x512xf32, #tpu.memory_space<vmem>>, vector<32x512xf32>,
    %c0_i32_62 = arith.constant 0 : i32
    %c8_i32_63 = arith.constant 8 : i32
    %198 = arith.muli %c0_i32_62, %c8_i32_63 : i32
    %199 = tpu.assume_multiple %198, 8 : i32
    %200 = arith.index_cast %199 : i32 to index
    %c0_64 = arith.constant 0 : index
    %201 = vector.load %arg7[%200, %c0_64] : memref<32x512xf32, #tpu.memory_space<vmem>>, vector<8x512xf32>
    %202 = arith.truncf %49 : vector<8x128xf32> to vector<8x128xbf16>
    %cst_65 = arith.constant dense<0.000000e+00> : vector<8x512xf32>
    %203 = tpu.matmul %202, %3, %cst_65 {dimension_numbers = #tpu.dot_dimension_numbers<[1], [0], [0], [1], [0, 0, 1, 1], [], []>} : vector<8x128xbf16>, vector<128x512xbf16>, vector<8x512xf32> -> vector<8x512xf32>
    %204 = arith.addf %201, %203 : vector<8x512xf32>
    %205 = vector.extract_strided_slice %204 {offsets = [0, 0], sizes = [8, 128], strides = [1, 1]} : vector<8x512xf32> to vector<8x128xf32>
    %206 = arith.negf %205 : vector<8x128xf32>
    %207 = math.exp %206 : vector<8x128xf32>
    %cst_66 = arith.constant 1.000000e+00 : f32
    %208 = vector.broadcast %cst_66 : f32 to vector<8x128xf32>
    %209 = arith.addf %208, %207 : vector<8x128xf32>
    %210 = arith.divf %208, %209 : vector<8x128xf32>
    %211 = vector.extract_strided_slice %204 {offsets = [0, 128], sizes = [8, 128], strides = [1, 1]} : vector<8x512xf32> to vector<8x128xf32>
    %212 = arith.negf %211 : vector<8x128xf32>
    %213 = math.exp %212 : vector<8x128xf32>
    %cst_67 = arith.constant 1.000000e+00 : f32
    %214 = vector.broadcast %cst_67 : f32 to vector<8x128xf32>
    %215 = arith.addf %214, %213 : vector<8x128xf32>
    %216 = arith.divf %214, %215 : vector<8x128xf32>
    %217 = vector.extract_strided_slice %204 {offsets = [0, 256], sizes = [8, 128], strides = [1, 1]} : vector<8x512xf32> to vector<8x128xf32>
    %218 = math.tanh %217 : vector<8x128xf32>
    %219 = vector.extract_strided_slice %204 {offsets = [0, 384], sizes = [8, 128], strides = [1, 1]} : vector<8x512xf32> to vector<8x128xf32>
    %220 = arith.negf %219 : vector<8x128xf32>
    %221 = math.exp %220 : vector<8x128xf32>
    %cst_68 = arith.constant 1.000000e+00 : f32
    %222 = vector.broadcast %cst_68 : f32 to vector<8x128xf32>
    %223 = arith.addf %222, %221 : vector<8x128xf32>
    %224 = arith.divf %222, %223 : vector<8x128xf32>
    %225 = arith.mulf %216, %49 : vector<8x128xf32>
    %226 = arith.mulf %210, %218 : vector<8x128xf32>
    %227 = arith.addf %225, %226 : vector<8x128xf32>
    %228 = math.tanh %227 : vector<8x128xf32>
    %229 = arith.mulf %224, %228 : vector<8x128xf32>
    %c1_i32_69 = arith.constant 1 : i32
    %c8_i32_70 = arith.constant 8 : i32
    %230 = arith.muli %c1_i32_69, %c8_i32_70 : i32
    %231 = tpu.assume_multiple %230, 8 : i32
    %232 = arith.index_cast %231 : i32 to index
    %c0_71 = arith.constant 0 : index
    %233 = vector.load %arg7[%232, %c0_71] : memref<32x512xf32, #tpu.memory_space<vmem>>, vector<8x512xf32>
    %234 = arith.truncf %229 : vector<8x128xf32> to vector<8x128xbf16>
    %cst_72 = arith.constant dense<0.000000e+00> : vector<8x512xf32>
    %235 = tpu.matmul %234, %3, %cst_72 {dimension_numbers = #tpu.dot_dimension_numbers<[1], [0], [0], [1], [0, 0, 1, 1], [], []>} : vector<8x128xbf16>, vector<128x512xbf16>, vector<8x512xf32> -> vector<8x512xf32>
    %236 = arith.addf %233, %235 : vector<8x512xf32>
    %237 = vector.extract_strided_slice %236 {offsets = [0, 0], sizes = [8, 128], strides = [1, 1]} : vector<8x512xf32> to vector<8x128xf32>
    %238 = arith.negf %237 : vector<8x128xf32>
    %239 = math.exp %238 : vector<8x128xf32>
    %cst_73 = arith.constant 1.000000e+00 : f32
    %240 = vector.broadcast %cst_73 : f32 to vector<8x128xf32>
    %241 = arith.addf %240, %239 : vector<8x128xf32>
    %242 = arith.divf %240, %241 : vector<8x128xf32>
    %243 = vector.extract_strided_slice %236 {offsets = [0, 128], sizes = [8, 128], strides = [1, 1]} : vector<8x512xf32> to vector<8x128xf32>
    %244 = arith.negf %243 : vector<8x128xf32>
    %245 = math.exp %244 : vector<8x128xf32>
    %cst_74 = arith.constant 1.000000e+00 : f32
    %246 = vector.broadcast %cst_74 : f32 to vector<8x128xf32>
    %247 = arith.addf %246, %245 : vector<8x128xf32>
    %248 = arith.divf %246, %247 : vector<8x128xf32>
    %249 = vector.extract_strided_slice %236 {offsets = [0, 256], sizes = [8, 128], strides = [1, 1]} : vector<8x512xf32> to vector<8x128xf32>
    %250 = math.tanh %249 : vector<8x128xf32>
    %251 = vector.extract_strided_slice %236 {offsets = [0, 384], sizes = [8, 128], strides = [1, 1]} : vector<8x512xf32> to vector<8x128xf32>
    %252 = arith.negf %251 : vector<8x128xf32>
    %253 = math.exp %252 : vector<8x128xf32>
    %cst_75 = arith.constant 1.000000e+00 : f32
    %254 = vector.broadcast %cst_75 : f32 to vector<8x128xf32>
    %255 = arith.addf %254, %253 : vector<8x128xf32>
    %256 = arith.divf %254, %255 : vector<8x128xf32>
    %257 = arith.mulf %248, %227 : vector<8x128xf32>
    %258 = arith.mulf %242, %250 : vector<8x128xf32>
    %259 = arith.addf %257, %258 : vector<8x128xf32>
    %260 = math.tanh %259 : vector<8x128xf32>
    %261 = arith.mulf %256, %260 : vector<8x128xf32>
    %c2_i32_76 = arith.constant 2 : i32
    %c8_i32_77 = arith.constant 8 : i32
    %262 = arith.muli %c2_i32_76, %c8_i32_77 : i32
    %263 = tpu.assume_multiple %262, 8 : i32
    %264 = arith.index_cast %263 : i32 to index
    %c0_78 = arith.constant 0 : index
    %265 = vector.load %arg7[%264, %c0_78] : memref<32x512xf32, #tpu.memory_space<vmem>>, vector<8x512xf32>
    %266 = arith.truncf %261 : vector<8x128xf32> to vector<8x128xbf16>
    %cst_79 = arith.constant dense<0.000000e+00> : vector<8x512xf32>
    %267 = tpu.matmul %266, %3, %cst_79 {dimension_numbers = #tpu.dot_dimension_numbers<[1], [0], [0], [1], [0, 0, 1, 1], [], []>} : vector<8x128xbf16>, vector<128x512xbf16>, vector<8x512xf32> -> vector<8x512xf32>
    %268 = arith.addf %265, %267 : vector<8x512xf32>
    %269 = vector.extract_strided_slice %268 {offsets = [0, 0], sizes = [8, 128], strides = [1, 1]} : vector<8x512xf32> to vector<8x128xf32>
    %270 = arith.negf %269 : vector<8x128xf32>
    %271 = math.exp %270 : vector<8x128xf32>
    %cst_80 = arith.constant 1.000000e+00 : f32
    %272 = vector.broadcast %cst_80 : f32 to vector<8x128xf32>
    %273 = arith.addf %272, %271 : vector<8x128xf32>
    %274 = arith.divf %272, %273 : vector<8x128xf32>
    %275 = vector.extract_strided_slice %268 {offsets = [0, 128], sizes = [8, 128], strides = [1, 1]} : vector<8x512xf32> to vector<8x128xf32>
    %276 = arith.negf %275 : vector<8x128xf32>
    %277 = math.exp %276 : vector<8x128xf32>
    %cst_81 = arith.constant 1.000000e+00 : f32
    %278 = vector.broadcast %cst_81 : f32 to vector<8x128xf32>
    %279 = arith.addf %278, %277 : vector<8x128xf32>
    %280 = arith.divf %278, %279 : vector<8x128xf32>
    %281 = vector.extract_strided_slice %268 {offsets = [0, 256], sizes = [8, 128], strides = [1, 1]} : vector<8x512xf32> to vector<8x128xf32>
    %282 = math.tanh %281 : vector<8x128xf32>
    %283 = vector.extract_strided_slice %268 {offsets = [0, 384], sizes = [8, 128], strides = [1, 1]} : vector<8x512xf32> to vector<8x128xf32>
    %284 = arith.negf %283 : vector<8x128xf32>
    %285 = math.exp %284 : vector<8x128xf32>
    %cst_82 = arith.constant 1.000000e+00 : f32
    %286 = vector.broadcast %cst_82 : f32 to vector<8x128xf32>
    %287 = arith.addf %286, %285 : vector<8x128xf32>
    %288 = arith.divf %286, %287 : vector<8x128xf32>
    %289 = arith.mulf %280, %259 : vector<8x128xf32>
    %290 = arith.mulf %274, %282 : vector<8x128xf32>
    %291 = arith.addf %289, %290 : vector<8x128xf32>
    %292 = math.tanh %291 : vector<8x128xf32>
    %293 = arith.mulf %288, %292 : vector<8x128xf32>
    %c3_i32_83 = arith.constant 3 : i32
    %c8_i32_84 = arith.constant 8 : i32
    %294 = arith.muli %c3_i32_83, %c8_i32_84 : i32
    %295 = tpu.assume_multiple %294, 8 : i32
    %296 = arith.index_cast %295 : i32 to index
    %c0_85 = arith.constant 0 : index
    %297 = vector.load %arg7[%296, %c0_85] : memref<32x512xf32, #tpu.memory_space<vmem>>, vector<8x512xf32>
    %298 = arith.truncf %293 : vector<8x128xf32> to vector<8x128xbf16>
    %cst_86 = arith.constant dense<0.000000e+00> : vector<8x512xf32>
    %299 = tpu.matmul %298, %3, %cst_86 {dimension_numbers = #tpu.dot_dimension_numbers<[1], [0], [0], [1], [0, 0, 1, 1], [], []>} : vector<8x128xbf16>, vector<128x512xbf16>, vector<8x512xf32> -> vector<8x512xf32>
    %300 = arith.addf %297, %299 : vector<8x512xf32>
    %301 = vector.extract_strided_slice %300 {offsets = [0, 0], sizes = [8, 128], strides = [1, 1]} : vector<8x512xf32> to vector<8x128xf32>
    %302 = arith.negf %301 : vector<8x128xf32>
    %303 = math.exp %302 : vector<8x128xf32>
    %cst_87 = arith.constant 1.000000e+00 : f32
    %304 = vector.broadcast %cst_87 : f32 to vector<8x128xf32>
    %305 = arith.addf %304, %303 : vector<8x128xf32>
    %306 = arith.divf %304, %305 : vector<8x128xf32>
    %307 = vector.extract_strided_slice %300 {offsets = [0, 128], sizes = [8, 128], strides = [1, 1]} : vector<8x512xf32> to vector<8x128xf32>
    %308 = arith.negf %307 : vector<8x128xf32>
    %309 = math.exp %308 : vector<8x128xf32>
    %cst_88 = arith.constant 1.000000e+00 : f32
    %310 = vector.broadcast %cst_88 : f32 to vector<8x128xf32>
    %311 = arith.addf %310, %309 : vector<8x128xf32>
    %312 = arith.divf %310, %311 : vector<8x128xf32>
    %313 = vector.extract_strided_slice %300 {offsets = [0, 256], sizes = [8, 128], strides = [1, 1]} : vector<8x512xf32> to vector<8x128xf32>
    %314 = math.tanh %313 : vector<8x128xf32>
    %315 = vector.extract_strided_slice %300 {offsets = [0, 384], sizes = [8, 128], strides = [1, 1]} : vector<8x512xf32> to vector<8x128xf32>
    %316 = arith.negf %315 : vector<8x128xf32>
    %317 = math.exp %316 : vector<8x128xf32>
    %cst_89 = arith.constant 1.000000e+00 : f32
    %318 = vector.broadcast %cst_89 : f32 to vector<8x128xf32>
    %319 = arith.addf %318, %317 : vector<8x128xf32>
    %320 = arith.divf %318, %319 : vector<8x128xf32>
    %321 = arith.mulf %312, %291 : vector<8x128xf32>
    %322 = arith.mulf %306, %314 : vector<8x128xf32>
    %323 = arith.addf %321, %322 : vector<8x128xf32>
    %324 = math.tanh %323 : vector<8x128xf32>
    %325 = arith.mulf %320, %324 : vector<8x128xf32>
    %c4_i32_90 = arith.constant 4 : i32
    %326 = arith.truncf %325 : vector<8x128xf32> to vector<8x128xbf16>
    %cst_91 = arith.constant dense<0.000000e+00> : vector<8x128xf32>
    %327 = tpu.matmul %326, %4, %cst_91 {dimension_numbers = #tpu.dot_dimension_numbers<[1], [0], [0], [1], [0, 0, 1, 1], [], []>} : vector<8x128xbf16>, vector<128x128xbf16>, vector<8x128xf32> -> vector<8x128xf32>
    %328 = vector.broadcast %9 : vector<1x128xf32> to vector<8x128xf32>
    %329 = arith.addf %327, %328 : vector<8x128xf32>
    %cst_92 = arith.constant 0.000000e+00 : f32
    %330 = vector.broadcast %cst_92 : f32 to vector<8x128xf32>
    %331 = arith.maximumf %329, %330 : vector<8x128xf32>
    %332 = arith.truncf %331 : vector<8x128xf32> to vector<8x128xbf16>
    %cst_93 = arith.constant dense<0.000000e+00> : vector<8x128xf32>
    %333 = tpu.matmul %332, %5, %cst_93 {dimension_numbers = #tpu.dot_dimension_numbers<[1], [0], [0], [1], [0, 0, 1, 1], [], []>} : vector<8x128xbf16>, vector<128x128xbf16>, vector<8x128xf32> -> vector<8x128xf32>
    %334 = vector.broadcast %10 : vector<1x128xf32> to vector<8x128xf32>
    %335 = arith.addf %333, %334 : vector<8x128xf32>
    %c0_94 = arith.constant 0 : index
    %c0_95 = arith.constant 0 : index
    %336 = vector.load %arg6[%c0_94, %c0_95] : memref<8x128xf32, #tpu.memory_space<vmem>>, vector<8x128xf32>
    tpu.vector_store %arg6[%c0_94, %c0_95], %335 {strides = array<i32>} : memref<8x128xf32, #tpu.memory_space<vmem>>, vector<8x128xf32>,
    return
  }
  func.func @transform_0(%arg0: i32) -> (i32, i32, i32) {
    %c0_i32 = arith.constant 0 : i32
    %c0_i32_0 = arith.constant 0 : i32
    %c0_i32_1 = arith.constant 0 : i32
    return %c0_i32, %arg0, %c0_i32_0 : i32, i32, i32
  }
  func.func @transform_1(%arg0: i32) -> (i32, i32) {
    %c0_i32 = arith.constant 0 : i32
    %c0_i32_0 = arith.constant 0 : i32
    %c0_i32_1 = arith.constant 0 : i32
    return %c0_i32, %c0_i32_0 : i32, i32
  }
  func.func @transform_2(%arg0: i32) -> (i32, i32) {
    %c0_i32 = arith.constant 0 : i32
    %c0_i32_0 = arith.constant 0 : i32
    %c0_i32_1 = arith.constant 0 : i32
    return %c0_i32, %c0_i32_0 : i32, i32
  }
  func.func @transform_3(%arg0: i32) -> (i32, i32) {
    %c0_i32 = arith.constant 0 : i32
    %c0_i32_0 = arith.constant 0 : i32
    %c0_i32_1 = arith.constant 0 : i32
    return %c0_i32, %c0_i32_0 : i32, i32
  }
  func.func @transform_4(%arg0: i32) -> (i32, i32) {
    %c0_i32 = arith.constant 0 : i32
    %c0_i32_0 = arith.constant 0 : i32
    %c0_i32_1 = arith.constant 0 : i32
    return %c0_i32, %c0_i32_0 : i32, i32
  }
  func.func @transform_5(%arg0: i32) -> (i32, i32) {
    %c0_i32 = arith.constant 0 : i32
    %c0_i32_0 = arith.constant 0 : i32
    return %arg0, %c0_i32 : i32, i32
  }
}

</mosaic_0001>

<bundles_post_ra>
// kernel: cnn_lstm_forward.1
= control target key start
LH: loop header
LB: loop body
LE: loop exit
PB: predicated region body
PF: predicated region fallthrough
CT: control target
= control target key end

     0   :  { %vm254_vm0 = vcmask 1043456   ;;  %vm229_vm1 = vcmask 195584   ;;  %v4619_v27 = vmov 0   ;;  %vm411_vm2 = vcmask 523264   ;;  %s4607_s1 = inlined_call_operand.vmem [shape: bf16[24,64], index: 1, kind: input, shape index: {}]   ;;  %s4608_s0 = inlined_call_operand.vmem [shape: f32[16,8,24], index: 0, kind: input, shape index: {}]   ;;  %s4609_s2 = inlined_call_operand.vmem [shape: bf16[192,128], index: 2, kind: input, shape index: {}]   ;;  %s4610_s4 = inlined_call_operand.vmem [shape: f32[1,1472], index: 4, kind: input, shape index: {}]   ;;  %s4611_s3 = inlined_call_operand.vmem [shape: bf16[128,2304], index: 3, kind: input, shape index: {}]   ;;  %s4612_s5 = inlined_call_operand.vmem [shape: f32[8,128], index: 5, kind: output, shape index: {}]  }
   0x1   :  { %v3005_v0 = vld [vmem:[%s4607_s1 + $0x8] ss:$0 sps:$4 sm:$0xff]   ;;  %v3006_v1 = vld [vmem:[%s4607_s1] sm:$0xff]   ;;  %v189_v6 = vld [vmem:[%s4608_s0 + $0x10] sm:$0xff]  ;;  %834 = vmatprep.mubr.bf16.mxu0 %v4619_v27  ;;  %vm3358_vm4 = vmmov 1   ;;  %vm3360_vm6 = vmmov 0  }
   0x2   :  { %v187_v2 = vld [vmem:[%s4608_s0] sm:$0xff]  ;;  %2979 = vmatprep.subr.msk.bf16.mxu1 %vm254_vm0, %v3005_v0  ;;  %v256_v3 = vsel %vm254_vm0, %v3005_v0, 0  ;;  %v188_v4 = vld [vmem:[%s4608_s0 + $0x8] sm:$0xff]  ;;  %v190_v7 = vld [vmem:[%s4608_s0 + $0x18] sm:$0xff] }
   0x3   :  { %2920 = vmatpush3.bf16.msra.mxu1 %v256_v3  ;;  %v206_v5 = vpack.c.bf16 %v188_v4, %v187_v2  ;;  %v191_v8 = vld [vmem:[%s4608_s0 + $0x20] sm:$0xff]  ;;  %v192_v9 = vld [vmem:[%s4608_s0 + $0x28] sm:$0xff]  ;;  %v207_v10 = vpack.c.bf16 %v190_v7, %v189_v6  ;;  %v193_v12 = vld [vmem:[%s4608_s0 + $0x30] sm:$0xff] }
   0x4   :  { %2921 = vmatprep.subr.bf16.mxu1 %v3006_v1  ;;  %v208_v11 = vpack.c.bf16 %v192_v9, %v191_v8  ;;  %v194_v13 = vld [vmem:[%s4608_s0 + $0x38] sm:$0xff]  ;;  %v195_v14 = vld [vmem:[%s4608_s0 + $0x40] sm:$0xff]  ;;  %v196_v15 = vld [vmem:[%s4608_s0 + $0x48] sm:$0xff] }
   0x5   :  { %2923 = vmatprep.mubr.msk.bf16.mxu1 %vm229_vm1, %v206_v5  ;;  %v209_v16 = vpack.c.bf16 %v194_v13, %v193_v12  ;;  %v210_v17 = vpack.c.bf16 %v196_v15, %v195_v14  ;;  %v197_v18 = vld [vmem:[%s4608_s0 + $0x50] sm:$0xff]  ;;  %v198_v19 = vld [vmem:[%s4608_s0 + $0x58] sm:$0xff]  ;;  %v199_v20 = vld [vmem:[%s4608_s0 + $0x60] sm:$0xff] }
   0x6   :  { %v200_v21 = vld [vmem:[%s4608_s0 + $0x68] sm:$0xff]  ;;  %v211_v22 = vpack.c.bf16 %v198_v19, %v197_v18  ;;  %v201_v24 = vld [vmem:[%s4608_s0 + $0x70] sm:$0xff]  ;;  %v202_v25 = vld [vmem:[%s4608_s0 + $0x78] sm:$0xff] }
   0x7   :  { %2922 = vmatpush3.bf16.msra.mxu1 %v3006_v1  ;;  %v212_v23 = vpack.c.bf16 %v200_v21, %v199_v20  ;;  %v213_v26 = vpack.c.bf16 %v202_v25, %v201_v24  ;;  %v3007_v28 = vld [vmem:[%s4609_s2 + $0x38] sm:$0xff]   ;;  %v3008_v29 = vld [vmem:[%s4609_s2 + $0x30] sm:$0xff]   ;;  %v3009_v30 = vld [vmem:[%s4609_s2 + $0x28] sm:$0xff]  }
   0x8   :  { %542 = vmatprep.subr.bf16.mxu1 %v4619_v27  ;;  %v3010_v31 = vld [vmem:[%s4609_s2 + $0x20] sm:$0xff]   ;;  %v3011_v32 = vld [vmem:[%s4609_s2 + $0x18] sm:$0xff]   ;;  %v3012_v33 = vld [vmem:[%s4609_s2 + $0x10] sm:$0xff]  }
   0x9   :  { %v3013_v34 = vld [vmem:[%s4609_s2 + $0x8] sm:$0xff]   ;;  %v3014_v35 = vld [vmem:[%s4609_s2] sm:$0xff]   ;;  %v3015_v36 = vld [vmem:[%s4609_s2 + $0x58] sm:$0xff]  }
   0xa   :  { %2924 = vmatmul.mubr.msk.bf16.vlgmr.msra.gmra.mxu1 %vm229_vm1, %v207_v10  ;;  %v3016_v37 = vld [vmem:[%s4609_s2 + $0x50] sm:$0xff]   ;;  %v3017_v38 = vld [vmem:[%s4609_s2 + $0x48] sm:$0xff]   ;;  %v3018_v42 = vld [vmem:[%s4609_s2 + $0x40] sm:$0xff]   ;;  %s3357_s2 = smov 64  }
   0xb   :  { %2927 = vmatprep.mubr.msk.bf16.mxu1 %vm229_vm1, %v208_v11  ;;  %543 = vmatpush1.bf16.msra.mxu1 %v3007_v28  ;;  %v3502_v40 = vld [vmem:[%s4610_s4 + $0xb] ss:$0 sm:$0xff]  ;;  %vm2714_vm3 = vmneg %vm411_vm2 }
   0xc   :  { %544 = vmatprep.subr.bf16.mxu1 %v4619_v27  ;;  %vm2715_vm5 = vmpackc.low %vm3358_vm4, %vm2714_vm3 }
   0xf   :  { %545 = vmatpush1.bf16.msra.mxu1 %v3008_v29 }
  0x10   :  { %546 = vmatprep.subr.bf16.mxu1 %v4619_v27 }
  0x12   :  { %2928 = vmatmul.mubr.msk.bf16.gmra.mxu1 %vm229_vm1, %v209_v16 }
  0x13   :  { %2931 = vmatprep.mubr.msk.bf16.mxu1 %vm229_vm1, %v210_v17  ;;  %547 = vmatpush1.bf16.msra.mxu1 %v3009_v30 }
  0x14   :  { %548 = vmatprep.subr.bf16.mxu1 %v4619_v27 }
  0x17   :  { %549 = vmatpush1.bf16.msra.mxu1 %v3010_v31 }
  0x18   :  { %550 = vmatprep.subr.bf16.mxu1 %v4619_v27 }
  0x1a   :  { %2932 = vmatmul.mubr.msk.bf16.gmra.mxu1 %vm229_vm1, %v211_v22 }
  0x1b   :  { %2935 = vmatprep.mubr.msk.bf16.mxu1 %vm229_vm1, %v212_v23  ;;  %551 = vmatpush1.bf16.msra.mxu1 %v3011_v32 }
  0x1c   :  { %552 = vmatprep.subr.bf16.mxu1 %v4619_v27 }
  0x1f   :  { %553 = vmatpush1.bf16.msra.mxu1 %v3012_v33 }
  0x20   :  { %554 = vmatprep.subr.bf16.mxu1 %v4619_v27 }
  0x22   :  { %2936 = vmatmul.mubr.msk.bf16.gmra.mxu1 %vm229_vm1, %v213_v26 }
  0x23   :  { %555 = vmatpush1.bf16.msra.mxu1 %v3013_v34 }
  0x24   :  { %556 = vmatprep.subr.bf16.mxu1 %v4619_v27 }
  0x27   :  { %557 = vmatpush1.bf16.msra.mxu1 %v3014_v35  ;;  %v3019_v35 = vld [vmem:[%s4611_s3 + $0x3f4] ss:$72 sps:$4 sm:$0xff]  }
  0x28   :  { %566 = vmatprep.subr.bf16.mxu1 %v4619_v27  ;;  %802 = vmatprep.subr.bf16.mxu0 %v3019_v35  ;;  %v3713_v35 = vld [vmem:[%s4611_s3 + $0x10] ss:$72 sps:$4 sm:$0xff]  }
  0x2b   :  { %567 = vmatpush2.bf16.msra.mxu1 %v3015_v36 }
  0x2c   :  { %568 = vmatprep.subr.bf16.mxu1 %v4619_v27 }
  0x2f   :  { %569 = vmatpush2.bf16.msra.mxu1 %v3016_v37 }
  0x30   :  { %570 = vmatprep.subr.bf16.mxu1 %v4619_v27 }
  0x33   :  { %571 = vmatpush2.bf16.msra.mxu1 %v3017_v38  ;;  %v3021_v38 = vld [vmem:[%s4611_s3 + $0x3f0] ss:$72 sps:$4 sm:$0xff]  }
  0x34   :  { %572 = vmatprep.subr.bf16.mxu1 %v4619_v27  ;;  %803 = vmatpush1.bf16.msra.mxu0 %v3021_v38 }
  0x37   :  { %573 = vmatpush2.bf16.msra.mxu1 %v3018_v42  ;;  %v3027_v42 = vld [vmem:[%s4611_s3 + $0x360] ss:$72 sps:$4 sm:$0xff]  }
  0xca   :  { %v2925_v39 = vpop.f32.mrf.mxu1 }
  0xcb   :  { %v301_v44 = vadd.f32 %v2925_v39, %v3502_v40  ;;  %v3556_v39 = vld [vmem:[%s4611_s3 + $0x404] ss:$72 sps:$4 sm:$0xff]  }
  0xcc   :  { %v292_v41 = vpop.f32.mrf.mxu1  ;;  %1091 = vmatprep.subr.bf16.mxu1 %v3556_v39 }
  0xcd   :  { %v293_v45 = vadd.f32 %v3502_v40, %v292_v41  ;;  %v357_v51 = vmax.f32 %v301_v44, 0.0  ;;  %v3030_v44 = vld [vmem:[%s4611_s3 + $0x2d4] ss:$72 sps:$4 sm:$0xff]  }
  0xce   :  { %v2926_v43 = vpop.f32.mrf.mxu1 }
  0xcf   :  { %v304_v46 = vadd.f32 %v2926_v43, %v3502_v40  ;;  %v355_v52 = vmax.f32 %v293_v45, 0.0  ;;  %v3033_v45 = vld [vmem:[%s4611_s3 + $0x2d0] ss:$72 sps:$4 sm:$0xff]  }
  0xd0   :  { %v295_v47 = vpop.f32.mrf.mxu1 }
  0xd1   :  { %v358_v48 = vmax.f32 %v304_v46, 0.0  ;;  %v296_v49 = vadd.f32 %v3502_v40, %v295_v47 }
  0xd2   :  { %v2929_v50 = vpop.f32.mrf.mxu1 }
  0xd3   :  { %v356_v53 = vmax.f32 %v296_v49, 0.0  ;;  %v3511_v55 = vmax.f32 %v357_v51, %v358_v48  ;;  %v317_v58 = vadd.f32 %v2929_v50, %v3502_v40  ;;  %v3578_v50 = vld [vmem:[%s4611_s3 + $0x400] ss:$72 sps:$4 sm:$0xff]  }
  0xd4   :  { %v308_v54 = vpop.f32.mrf.mxu1 }
  0xd5   :  { %v3513_v56 = vmax.f32 %v355_v52, %v356_v53  ;;  %v309_v59 = vadd.f32 %v3502_v40, %v308_v54  ;;  %v361_v2 = vmax.f32 %v317_v58, 0.0  ;;  %v3583_v52 = vld [vmem:[%s4611_s3 + $0x374] ss:$72 sps:$4 sm:$0xff]   ;;  %v3592_v54 = vld [vmem:[%s4611_s3 + $0x370] ss:$72 sps:$4 sm:$0xff]  }
  0xd6   :  { %v2930_v57 = vpop.f32.mrf.mxu1 }
  0xd7   :  { %v320_v60 = vadd.f32 %v2930_v57, %v3502_v40  ;;  %v2985_v61 = vpack.i.bf16 %v3513_v56, %v3511_v55  ;;  %v359_v3 = vmax.f32 %v309_v59, 0.0  ;;  %v3598_v57 = vld [vmem:[%s4611_s3 + $0x2e4] ss:$72 sps:$4 sm:$0xff]  }
  0xd8   :  { %v311_v62 = vpop.f32.mrf.mxu1 }
  0xd9   :  { %v362_v63 = vmax.f32 %v320_v60, 0.0  ;;  %v312_v0 = vadd.f32 %v3502_v40, %v311_v62  ;;  %2986 = vrot.lane.b32.xlu0 %v2985_v61, %s3357_s2 }
  0xda   :  { %v2933_v1 = vpop.f32.mrf.mxu1 }
  0xdb   :  { %v360_v4 = vmax.f32 %v312_v0, 0.0  ;;  %v333_v5 = vadd.f32 %v2933_v1, %v3502_v40  ;;  %v3523_v7 = vmax.f32 %v361_v2, %v362_v63 }
  0xdc   :  { %v324_v6 = vpop.f32.mrf.mxu1 }
  0xdd   :  { %v3525_v8 = vmax.f32 %v359_v3, %v360_v4  ;;  %v325_v9 = vadd.f32 %v3502_v40, %v324_v6  ;;  %v365_v11 = vmax.f32 %v333_v5, 0.0  ;;  %v4613_v5 = vmov 0.0  }
  0xde   :  { %v2934_v10 = vpop.f32.mrf.mxu1 }
  0xdf   :  { %v336_v12 = vadd.f32 %v2934_v10, %v3502_v40  ;;  %v445_v13 = vpack.c.bf16 %v3525_v8, %v3511_v55  ;;  %v2990_v14 = vpack.i.bf16 %v3523_v7, %v3525_v8  ;;  %v363_v16 = vmax.f32 %v325_v9, 0.0 }
  0xe0   :  { %v327_v15 = vpop.f32.mrf.mxu1 }
  0xe1   :  { %v366_v17 = vmax.f32 %v336_v12, 0.0  ;;  %v328_v18 = vadd.f32 %v3502_v40, %v327_v15  ;;  %2713 = vmatprep.mubr.msk.bf16.mxu1 %vm411_vm2, %v445_v13  ;;  %2991 = vrot.lane.b32.xlu0 %v2990_v14, %s3357_s2  ;;  %v3624_v14 = vld [vmem:[%s4611_s3 + $0x2e0] ss:$72 sps:$4 sm:$0xff]  }
  0xe2   :  { %v2937_v19 = vpop.f32.mrf.mxu1  ;;  %v3039_v15 = vld [vmem:[%s4611_s3 + $0x240] ss:$72 sps:$4 sm:$0xff]  }
  0xe3   :  { %v3536_v20 = vmax.f32 %v365_v11, %v366_v17  ;;  %v364_v21 = vmax.f32 %v328_v18, 0.0  ;;  %v349_v22 = vadd.f32 %v2937_v19, %v3502_v40  ;;  %v3042_v17 = vld [vmem:[%s4611_s3 + $0x1b4] ss:$72 sps:$4 sm:$0xff]   ;;  %v3641_v18 = vld [vmem:[%s4611_s3 + $0x250] ss:$72 sps:$4 sm:$0xff]  }
  0xe4   :  { %v340_v23 = vpop.f32.mrf.mxu1  ;;  %v3045_v19 = vld [vmem:[%s4611_s3 + $0x1b0] ss:$72 sps:$4 sm:$0xff]  }
  0xe5   :  { %v3539_v24 = vmax.f32 %v363_v16, %v364_v21  ;;  %v341_v25 = vadd.f32 %v3502_v40, %v340_v23  ;;  %v369_v28 = vmax.f32 %v349_v22, 0.0  ;;  %v3633_v16 = vld [vmem:[%s4611_s3 + $0x254] ss:$72 sps:$4 sm:$0xff]   ;;  %v3048_v21 = vld [vmem:[%s4611_s3 + $0x124] ss:$72 sps:$4 sm:$0xff]  }
  0xe6   :  { %v2938_v26 = vpop.f32.mrf.mxu1  ;;  %v3659_v22 = vld [vmem:[%s4611_s3 + $0x1c0] ss:$72 sps:$4 sm:$0xff]  }
  0xe7   :  { %v352_v29 = vadd.f32 %v2938_v26, %v3502_v40  ;;  %v2995_v30 = vpack.i.bf16 %v3536_v20, %v3539_v24  ;;  %v367_v32 = vmax.f32 %v341_v25, 0.0  ;;  %v447_v53 = vpack.c.bf16 %v3539_v24, %v3523_v7  ;;  %v3051_v23 = vld [vmem:[%s4611_s3 + $0x120] ss:$72 sps:$4 sm:$0xff]   ;;  %v3054_v25 = vld [vmem:[%s4611_s3 + $0x94] ss:$72 sps:$4 sm:$0xff]  }
  0xe8   :  { %v343_v31 = vpop.f32.mrf.mxu1  ;;  %v3677_v26 = vld [vmem:[%s4611_s3 + $0x130] ss:$72 sps:$4 sm:$0xff]  }
  0xe9   :  { %v370_v33 = vmax.f32 %v352_v29, 0.0  ;;  %v344_v34 = vadd.f32 %v3502_v40, %v343_v31  ;;  %2996 = vrot.lane.b32.xlu1 %v2995_v30, %s3357_s2  ;;  %v3024_v40 = vld [vmem:[%s4611_s3 + $0x364] ss:$72 sps:$4 sm:$0xff]   ;;  %v3695_v31 = vld [vmem:[%s4611_s3 + $0xa0] ss:$72 sps:$4 sm:$0xff]  }
  0xea   :  { %804 = vmatprep.subr.bf16.mxu0 %v3024_v40  ;;  %v3687_v29 = vld [vmem:[%s4611_s3 + $0xa4] ss:$72 sps:$4 sm:$0xff]   ;;  %v2700_v40 = vld [vmem:[%s4610_s4 + $0x8] ss:$0 sm:$0xff] }
  0xeb   :  { %v378_v36 = vmax.f32 %v369_v28, %v370_v33  ;;  %v368_v37 = vmax.f32 %v344_v34, 0.0  ;;  %805 = vmatpush1.bf16.msra.mxu0 %v3027_v42  ;;  %v3057_v28 = vld [vmem:[%s4611_s3 + $0x90] ss:$72 sps:$4 sm:$0xff]   ;;  %v3060_v30 = vld [vmem:[%s4611_s3 + $0x4] ss:$72 sps:$4 sm:$0xff]  }
  0xec   :  { %806 = vmatprep.subr.bf16.mxu0 %v3030_v44  ;;  %v3705_v33 = vld [vmem:[%s4611_s3 + $0x14] ss:$72 sps:$4 sm:$0xff]  }
  0xed   :  { %v377_v41 = vmax.f32 %v367_v32, %v368_v37  ;;  %v451_v6 = vpack.c.bf16 %v4613_v5, %v378_v36  ;;  %v3063_v32 = vld [vmem:[%s4611_s3] ss:$72 sps:$4 sm:$0xff]   ;;  %v3068_v34 = vld [vmem:[%s4611_s3 + $0x3fc] ss:$72 sps:$4 sm:$0xff]  }
  0xef   :  { %v3000_v43 = vpack.i.bf16 %v378_v36, %v377_v41  ;;  %807 = vmatpush1.bf16.msra.mxu0 %v3033_v45  ;;  %v449_v63 = vpack.c.bf16 %v377_v41, %v3536_v20 }
  0xf1   :  { %3001 = vrot.lane.b32.xlu1 %v3000_v43, %s3357_s2 }
 0x14b   :  { %v2987_v46 = vpop.permute.xlu0 %2986 }
 0x14c   :  { %v2989_v47 = vunpack.i.h.bf16 %v2987_v46  ;;  %v2988_v48 = vunpack.i.l.bf16 %v2987_v46 }
 0x14e   :  { %v413_v49 = vsel %vm411_vm2, %v3513_v56, %v2988_v48 }
 0x14f   :  { %v2716_v51 = vpack.c.bf16 %v413_v49, %v2989_v47 }
 0x151   :  { %2717 = vmatmul.mubr.msk.bf16.vlgmr.msra.gmra.mxu1 %vm2715_vm5, %v2716_v51 }
 0x152   :  { %2718 = vmatprep.mubr.msk.bf16.mxu1 %vm411_vm2, %v447_v53  ;;  %1092 = vmatpush1.bf16.msra.mxu1 %v3578_v50 }
 0x153   :  { %v2992_v56 = vpop.permute.xlu0 %2991  ;;  %1093 = vmatprep.subr.bf16.mxu1 %v3583_v52 }
 0x154   :  { %v2994_v58 = vunpack.i.h.bf16 %v2992_v56  ;;  %v2993_v59 = vunpack.i.l.bf16 %v2992_v56 }
 0x156   :  { %v414_v60 = vsel %vm411_vm2, %v3511_v55, %v2993_v59  ;;  %v415_v61 = vsel %vm411_vm2, %v3525_v8, %v2994_v58  ;;  %1094 = vmatpush1.bf16.msra.mxu1 %v3592_v54 }
 0x157   :  { %v446_v62 = vpack.c.bf16 %v415_v61, %v414_v60  ;;  %1095 = vmatprep.subr.bf16.mxu1 %v3598_v57 }
 0x159   :  { %583 = vmatmul.mubr.bf16.gmra.mxu1 %v446_v62  ;;  %v3066_v62 = vld [vmem:[%s4611_s3 + $0x3f8] ss:$72 sps:$4 sm:$0xff]  }
 0x15a   :  { %2719 = vmatprep.mubr.msk.bf16.mxu1 %vm411_vm2, %v449_v63  ;;  %1096 = vmatpush1.bf16.msra.mxu1 %v3624_v14 }
 0x15b   :  { %v2997_v0 = vpop.permute.xlu1 %2996  ;;  %1097 = vmatprep.subr.bf16.mxu1 %v3633_v16 }
 0x15c   :  { %v2999_v1 = vunpack.i.h.bf16 %v2997_v0  ;;  %v2998_v2 = vunpack.i.l.bf16 %v2997_v0  ;;  %v3072_v0 = vld [vmem:[%s4611_s3 + $0x36c] ss:$72 sps:$4 sm:$0xff]  }
 0x15e   :  { %v416_v3 = vsel %vm411_vm2, %v3523_v7, %v2998_v2  ;;  %v417_v55 = vsel %vm411_vm2, %v3539_v24, %v2999_v1  ;;  %v3036_v7 = vld [vmem:[%s4611_s3 + $0x244] ss:$72 sps:$4 sm:$0xff]   ;;  %1098 = vmatpush1.bf16.msra.mxu1 %v3641_v18  ;;  %v3669_v24 = vld [vmem:[%s4611_s3 + $0x134] ss:$72 sps:$4 sm:$0xff]  }
 0x15f   :  { %v448_v4 = vpack.c.bf16 %v417_v55, %v416_v3  ;;  %808 = vmatprep.subr.bf16.mxu0 %v3036_v7  ;;  %v3070_v3 = vld [vmem:[%s4611_s3 + $0x368] ss:$72 sps:$4 sm:$0xff]   ;;  %v3075_v55 = vld [vmem:[%s4611_s3 + $0x2dc] ss:$72 sps:$4 sm:$0xff]  }
 0x160   :  { %809 = vmatpush1.bf16.msra.mxu0 %v3039_v15 }
 0x161   :  { %591 = vmatmul.mubr.bf16.gmra.mxu1 %v448_v4  ;;  %810 = vmatprep.subr.bf16.mxu0 %v3042_v17 }
 0x162   :  { %2720 = vmatprep.mubr.msk.bf16.mxu1 %vm411_vm2, %v451_v6 }
 0x163   :  { %v3002_v8 = vpop.permute.xlu1 %3001 }
 0x164   :  { %v3004_v9 = vunpack.i.h.bf16 %v3002_v8  ;;  %v3003_v10 = vunpack.i.l.bf16 %v3002_v8  ;;  %811 = vmatpush1.bf16.msra.mxu0 %v3045_v19  ;;  %v3076_v19 = vld [vmem:[%s4611_s3 + $0x248] ss:$72 sps:$4 sm:$0xff]  }
 0x165   :  { %812 = vmatprep.subr.bf16.mxu0 %v3048_v21 }
 0x166   :  { %v418_v11 = vsel %vm411_vm2, %v3536_v20, %v3003_v10  ;;  %v419_v12 = vsel %vm411_vm2, %v377_v41, %v3004_v9  ;;  %v3651_v20 = vld [vmem:[%s4611_s3 + $0x1c4] ss:$72 sps:$4 sm:$0xff]   ;;  %v3073_v9 = vld [vmem:[%s4611_s3 + $0x2d8] ss:$72 sps:$4 sm:$0xff]  }
 0x167   :  { %v450_v13 = vpack.c.bf16 %v419_v12, %v418_v11  ;;  %1099 = vmatprep.subr.bf16.mxu1 %v3651_v20  ;;  %v3078_v12 = vld [vmem:[%s4611_s3 + $0x24c] ss:$72 sps:$4 sm:$0xff]  }
 0x168   :  { %1100 = vmatpush1.bf16.msra.mxu1 %v3659_v22  ;;  %813 = vmatpush1.bf16.msra.mxu0 %v3051_v23 }
 0x169   :  { %599 = vmatmul.mubr.bf16.gmra.mxu1 %v450_v13  ;;  %1101 = vmatprep.subr.bf16.mxu1 %v3669_v24 }
 0x16a   :  { %1123 = vmatprep.mubr.bf16.mxu1 %v4619_v27  ;;  %814 = vmatprep.subr.bf16.mxu0 %v3054_v25 }
 0x16c   :  { %1102 = vmatpush1.bf16.msra.mxu1 %v3677_v26  ;;  %815 = vmatpush1.bf16.msra.mxu0 %v3057_v28  ;;  %v3081_v28 = vld [vmem:[%s4611_s3 + $0x1bc] ss:$72 sps:$4 sm:$0xff]  }
 0x16d   :  { %1103 = vmatprep.subr.bf16.mxu1 %v3687_v29  ;;  %816 = vmatprep.subr.bf16.mxu0 %v3060_v30 }
 0x170   :  { %1104 = vmatpush1.bf16.msra.mxu1 %v3695_v31  ;;  %817 = vmatpush1.bf16.msra.mxu0 %v3063_v32 }
 0x171   :  { %1105 = vmatprep.subr.bf16.mxu1 %v3705_v33  ;;  %855 = vmatprep.subr.bf16.mxu0 %v3068_v34  ;;  %v3079_v34 = vld [vmem:[%s4611_s3 + $0x1b8] ss:$72 sps:$4 sm:$0xff]  }
 0x174   :  { %1106 = vmatpush1.bf16.msra.mxu1 %v3713_v35 }
 0x175   :  { %1210 = vmatprep.subr.bf16.mxu1 %v3556_v39 }
 0x177   :  { %1124 = vmatmul.mubr.bf16.vlgmr.msra.gmra.mxu1 %v4619_v27 }
 0x178   :  { %1211 = vmatpush1.bf16.msra.mxu1 %v3578_v50  ;;  %1242 = vmatprep.mubr.bf16.mxu1 %v4619_v27 }
 0x179   :  { %1212 = vmatprep.subr.bf16.mxu1 %v3583_v52 }
 0x17c   :  { %1213 = vmatpush1.bf16.msra.mxu1 %v3592_v54 }
 0x17d   :  { %1214 = vmatprep.subr.bf16.mxu1 %v3598_v57 }
 0x180   :  { %1215 = vmatpush1.bf16.msra.mxu1 %v3624_v14 }
 0x181   :  { %1216 = vmatprep.subr.bf16.mxu1 %v3633_v16 }
 0x184   :  { %1217 = vmatpush1.bf16.msra.mxu1 %v3641_v18 }
 0x185   :  { %1218 = vmatprep.subr.bf16.mxu1 %v3651_v20 }
 0x188   :  { %1219 = vmatpush1.bf16.msra.mxu1 %v3659_v22 }
 0x189   :  { %1220 = vmatprep.subr.bf16.mxu1 %v3669_v24 }
 0x18c   :  { %1221 = vmatpush1.bf16.msra.mxu1 %v3677_v26 }
 0x18d   :  { %1222 = vmatprep.subr.bf16.mxu1 %v3687_v29 }
 0x190   :  { %1223 = vmatpush1.bf16.msra.mxu1 %v3695_v31 }
 0x191   :  { %1224 = vmatprep.subr.bf16.mxu1 %v3705_v33 }
 0x194   :  { %1225 = vmatpush1.bf16.msra.mxu1 %v3713_v35 }
 0x195   :  { %1330 = vmatprep.subr.bf16.mxu1 %v3556_v39 }
 0x211   :  { %v576_v36 = vpop.f32.mrf.mxu1 }
 0x212   :  { %v577_v45 = vadd.f32 %v2700_v40, %v576_v36 }
 0x213   :  { %v578_v37 = vpop.f32.mrf.mxu1 }
 0x214   :  { %v607_v53 = vmax.f32 %v577_v45, 0.0  ;;  %v3084_v37 = vld [vmem:[%s4611_s3 + $0x12c] ss:$72 sps:$4 sm:$0xff]   ;;  %v3794_v45 = vld [vmem:[%s4611_s3 + $0x408] ss:$72 sps:$4 sm:$0xff]  }
 0x215   :  { %v579_v38 = vpop.f32.mrf.mxu1 }
 0x216   :  { %v580_v43 = vadd.f32 %v2700_v40, %v579_v38  ;;  %v3082_v38 = vld [vmem:[%s4611_s3 + $0x128] ss:$72 sps:$4 sm:$0xff]  }
 0x217   :  { %v581_v41 = vpop.f32.mrf.mxu1 }
 0x218   :  { %v608_v48 = vmax.f32 %v580_v43, 0.0  ;;  %v3087_v41 = vld [vmem:[%s4611_s3 + $0x9c] ss:$72 sps:$4 sm:$0xff]   ;;  %v3088_v43 = vld [vmem:[%s4611_s3 + $0x8] ss:$72 sps:$4 sm:$0xff]  }
 0x219   :  { %v584_v42 = vpop.f32.mrf.mxu1 }
 0x21a   :  { %v585_v46 = vadd.f32 %v2700_v40, %v584_v42  ;;  %v615_v59 = vmax.f32 %v607_v53, %v608_v48  ;;  %v3090_v42 = vld [vmem:[%s4611_s3 + $0xc] ss:$72 sps:$4 sm:$0xff]   ;;  %v3831_v53 = vld [vmem:[%s4611_s3 + $0x258] ss:$72 sps:$4 sm:$0xff]  }
 0x21b   :  { %v586_v44 = vpop.f32.mrf.mxu1  ;;  %v3813_v48 = vld [vmem:[%s4611_s3 + $0x2ec] ss:$72 sps:$4 sm:$0xff]  }
 0x21c   :  { %v609_v56 = vmax.f32 %v585_v46, 0.0  ;;  %v3789_v44 = vld [vmem:[%s4611_s3 + $0x40c] ss:$72 sps:$4 sm:$0xff]   ;;  %v3800_v46 = vld [vmem:[%s4611_s3 + $0x37c] ss:$72 sps:$4 sm:$0xff]  }
 0x21d   :  { %v587_v47 = vpop.f32.mrf.mxu1 }
 0x21e   :  { %v588_v49 = vadd.f32 %v2700_v40, %v587_v47  ;;  %v3806_v47 = vld [vmem:[%s4611_s3 + $0x378] ss:$72 sps:$4 sm:$0xff]  }
 0x21f   :  { %v589_v51 = vpop.f32.mrf.mxu1 }
 0x220   :  { %v610_v39 = vmax.f32 %v588_v49, 0.0  ;;  %v3819_v49 = vld [vmem:[%s4611_s3 + $0x2e8] ss:$72 sps:$4 sm:$0xff]   ;;  %v3825_v51 = vld [vmem:[%s4611_s3 + $0x25c] ss:$72 sps:$4 sm:$0xff]  }
 0x221   :  { %v592_v58 = vpop.f32.mrf.mxu1 }
 0x222   :  { %v616_v60 = vmax.f32 %v609_v56, %v610_v39  ;;  %v593_v10 = vadd.f32 %v2700_v40, %v592_v58  ;;  %v3838_v56 = vld [vmem:[%s4611_s3 + $0x1cc] ss:$72 sps:$4 sm:$0xff]   ;;  %v3844_v39 = vld [vmem:[%s4611_s3 + $0x1c8] ss:$72 sps:$4 sm:$0xff]   ;;  %v3850_v58 = vld [vmem:[%s4611_s3 + $0x13c] ss:$72 sps:$4 sm:$0xff]  }
 0x223   :  { %v594_v61 = vpop.f32.mrf.mxu1 }
 0x224   :  { %v619_v63 = vpack.c.bf16 %v616_v60, %v615_v59  ;;  %v611_v21 = vmax.f32 %v593_v10, 0.0  ;;  %v3856_v59 = vld [vmem:[%s4611_s3 + $0x138] ss:$72 sps:$4 sm:$0xff]   ;;  %v3862_v60 = vld [vmem:[%s4611_s3 + $0xac] ss:$72 sps:$4 sm:$0xff]  }
 0x225   :  { %v595_v1 = vpop.f32.mrf.mxu1  ;;  %v3868_v61 = vld [vmem:[%s4611_s3 + $0xa8] ss:$72 sps:$4 sm:$0xff]  }
 0x226   :  { %835 = vmatmul.mubr.bf16.vlgmr.msra.gmra.mxu0 %v619_v63  ;;  %v596_v6 = vadd.f32 %v2700_v40, %v595_v1 }
 0x227   :  { %856 = vmatpush1.bf16.msra.mxu0 %v3066_v62  ;;  %v597_v2 = vpop.f32.mrf.mxu1  ;;  %844 = vmatprep.mubr.bf16.mxu0 %v4619_v27  ;;  %v3874_v62 = vld [vmem:[%s4611_s3 + $0x1c] ss:$72 sps:$4 sm:$0xff]  }
 0x228   :  { %857 = vmatprep.subr.bf16.mxu0 %v3072_v0  ;;  %v612_v7 = vmax.f32 %v596_v6, 0.0 }
 0x229   :  { %v600_v4 = vpop.f32.mrf.mxu1 }
 0x22a   :  { %v601_v11 = vadd.f32 %v2700_v40, %v600_v4  ;;  %v617_v30 = vmax.f32 %v611_v21, %v612_v7 }
 0x22b   :  { %858 = vmatpush1.bf16.msra.mxu0 %v3070_v3  ;;  %v602_v8 = vpop.f32.mrf.mxu1 }
 0x22c   :  { %859 = vmatprep.subr.bf16.mxu0 %v3075_v55  ;;  %v613_v23 = vmax.f32 %v601_v11, 0.0  ;;  %v622_v55 = vlaneseq  ;;  %v181_v8 = vld [vmem:[%s4610_s4] sm:$0xf] }
 0x22d   :  { %v603_v13 = vpop.f32.mrf.mxu1 }
 0x22e   :  { %v604_v15 = vadd.f32 %v2700_v40, %v603_v13  ;;  %v3085_v40 = vld [vmem:[%s4611_s3 + $0x98] ss:$72 sps:$4 sm:$0xff]   ;;  %v3903_v4 = vshrl.u32 %v622_v55, 7 }
 0x22f   :  { %860 = vmatpush1.bf16.msra.mxu0 %v3073_v9  ;;  %v605_v17 = vpop.f32.mrf.mxu1 }
 0x230   :  { %v614_v25 = vmax.f32 %v604_v15, 0.0  ;;  %861 = vmatprep.subr.bf16.mxu0 %v3078_v12  ;;  %4623 = vst [vmem:[#allocation4_spill] sm:$0xff] %v3903_v4  ;;  %v4618_v6 = vsub.s32 0, %v3903_v4  ;;  %v4617_v10 = vsub.s32 1, %v3903_v4 }
 0x232   :  { %v618_v32 = vmax.f32 %v613_v23, %v614_v25  ;;  %v625_v12 = vrot.slane %v181_v8, %v4618_v6  ;;  %v629_v7 = vrot.slane %v181_v8, %v4617_v10 }
 0x233   :  { %862 = vmatpush1.bf16.msra.mxu0 %v3076_v19 }
 0x234   :  { %863 = vmatprep.subr.bf16.mxu0 %v3081_v28  ;;  %v620_v36 = vpack.c.bf16 %v618_v32, %v617_v30 }
 0x236   :  { %845 = vmatmul.mubr.bf16.gmra.mxu0 %v620_v36 }
 0x237   :  { %864 = vmatpush1.bf16.msra.mxu0 %v3079_v34  ;;  %887 = vmatprep.mubr.bf16.mxu0 %v4619_v27  ;;  %v1125_v0 = vpop.f32.mrf.mxu1 }
 0x238   :  { %865 = vmatprep.subr.bf16.mxu0 %v3084_v37  ;;  %v4615_v37 = vsub.s32 2, %v3903_v4 }
 0x239   :  { %v1127_v1 = vpop.f32.mrf.mxu1 }
 0x23b   :  { %866 = vmatpush1.bf16.msra.mxu0 %v3082_v38  ;;  %v1129_v2 = vpop.f32.mrf.mxu1 }
 0x23c   :  { %867 = vmatprep.subr.bf16.mxu0 %v3087_v41  ;;  %v633_v2 = vrot.slane %v181_v8, %v4615_v37 }
 0x23d   :  { %v1130_v3 = vpop.f32.mrf.mxu1 }
 0x23f   :  { %868 = vmatpush1.bf16.msra.mxu0 %v3085_v40  ;;  %v4616_v40 = vsub.s32 3, %v3903_v4 }
 0x240   :  { %869 = vmatprep.subr.bf16.mxu0 %v3090_v42 }
 0x243   :  { %870 = vmatpush1.bf16.msra.mxu0 %v3088_v43 }
 0x244   :  { %1132 = vmatprep.subr.bf16.mxu0 %v3789_v44 }
 0x246   :  { %888 = vmatmul.mubr.bf16.vlgmr.msra.gmra.mxu0 %v619_v63  ;;  %v3880_v63 = vld [vmem:[%s4611_s3 + $0x18] ss:$72 sps:$4 sm:$0xff]  }
 0x247   :  { %1133 = vmatpush1.bf16.msra.mxu0 %v3794_v45  ;;  %897 = vmatprep.mubr.bf16.mxu0 %v4619_v27 }
 0x248   :  { %1134 = vmatprep.subr.bf16.mxu0 %v3800_v46 }
 0x24b   :  { %1135 = vmatpush1.bf16.msra.mxu0 %v3806_v47 }
 0x24c   :  { %1136 = vmatprep.subr.bf16.mxu0 %v3813_v48 }
 0x24e   :  { %898 = vmatmul.mubr.bf16.gmra.mxu0 %v620_v36 }
 0x24f   :  { %1137 = vmatpush1.bf16.msra.mxu0 %v3819_v49  ;;  %1164 = vmatprep.mubr.bf16.mxu0 %v4619_v27 }
 0x250   :  { %1138 = vmatprep.subr.bf16.mxu0 %v3825_v51 }
 0x253   :  { %1139 = vmatpush1.bf16.msra.mxu0 %v3831_v53 }
 0x254   :  { %1140 = vmatprep.subr.bf16.mxu0 %v3838_v56 }
 0x257   :  { %1141 = vmatpush1.bf16.msra.mxu0 %v3844_v39 }
 0x258   :  { %1142 = vmatprep.subr.bf16.mxu0 %v3850_v58 }
 0x25b   :  { %1143 = vmatpush1.bf16.msra.mxu0 %v3856_v59 }
 0x25c   :  { %1144 = vmatprep.subr.bf16.mxu0 %v3862_v60 }
 0x25f   :  { %1145 = vmatpush1.bf16.msra.mxu0 %v3868_v61 }
 0x260   :  { %1146 = vmatprep.subr.bf16.mxu0 %v3874_v62 }
 0x263   :  { %1147 = vmatpush1.bf16.msra.mxu0 %v3880_v63 }
 0x264   :  { %1251 = vmatprep.subr.bf16.mxu0 %v3789_v44 }
 0x266   :  { %1165 = vmatmul.mubr.bf16.vlgmr.msra.gmra.mxu0 %v4619_v27 }
 0x267   :  { %1252 = vmatpush1.bf16.msra.mxu0 %v3794_v45  ;;  %1283 = vmatprep.mubr.bf16.mxu0 %v4619_v27 }
 0x268   :  { %1253 = vmatprep.subr.bf16.mxu0 %v3800_v46 }
 0x26b   :  { %1254 = vmatpush1.bf16.msra.mxu0 %v3806_v47 }
 0x26c   :  { %1255 = vmatprep.subr.bf16.mxu0 %v3813_v48 }
 0x26f   :  { %1256 = vmatpush1.bf16.msra.mxu0 %v3819_v49 }
 0x270   :  { %1257 = vmatprep.subr.bf16.mxu0 %v3825_v51 }
 0x273   :  { %1258 = vmatpush1.bf16.msra.mxu0 %v3831_v53 }
 0x274   :  { %1259 = vmatprep.subr.bf16.mxu0 %v3838_v56 }
 0x277   :  { %1260 = vmatpush1.bf16.msra.mxu0 %v3844_v39 }
 0x278   :  { %1261 = vmatprep.subr.bf16.mxu0 %v3850_v58 }
 0x27b   :  { %1262 = vmatpush1.bf16.msra.mxu0 %v3856_v59 }
 0x27c   :  { %1263 = vmatprep.subr.bf16.mxu0 %v3862_v60 }
 0x27f   :  { %1264 = vmatpush1.bf16.msra.mxu0 %v3868_v61 }
 0x280   :  { %1265 = vmatprep.subr.bf16.mxu0 %v3874_v62 }
 0x283   :  { %1266 = vmatpush1.bf16.msra.mxu0 %v3880_v63 }
 0x284   :  { %1371 = vmatprep.subr.bf16.mxu0 %v3789_v44 }
 0x2e6   :  { %v836_v9 = vpop.f32.mrf.mxu0 }
 0x2e7   :  { %v837_v42 = vadd.f32 %v836_v9, %v625_v12 }
 0x2e8   :  { %v838_v11 = vpop.f32.mrf.mxu0 }
 0x2e9   :  { %v839_v41 = vadd.f32 %v838_v11, %v629_v7 }
 0x2ea   :  { %v840_v13 = vpop.f32.mrf.mxu0 }
 0x2eb   :  { %v3914_v15 = vadd.f32 %v840_v13, %v625_v12  ;;  %v1174_v55 = vadd.f32 %v1127_v1, %v839_v41  ;;  %v637_v13 = vrot.slane %v181_v8, %v4616_v40 }
 0x2ec   :  { %v842_v17 = vpop.f32.mrf.mxu0 }
 0x2ed   :  { %v3916_v19 = vadd.f32 %v842_v17, %v629_v7  ;;  %v2786_v11 = vmul.f32 -1.442695, %v1174_v55 }
 0x2ef   :  { %3227 = vpow2.f32 %v2786_v11 }
 0x2f6   :  { %v846_v21 = vpop.f32.mrf.mxu0 }
 0x2f7   :  { %v3918_v23 = vadd.f32 %v846_v21, %v625_v12  ;;  %v1173_v21 = vadd.f32 %v1125_v0, %v837_v42 }
 0x2f8   :  { %v848_v25 = vpop.f32.mrf.mxu0 }
 0x2f9   :  { %v3920_v28 = vadd.f32 %v848_v25, %v629_v7  ;;  %v2785_v9 = vmul.f32 -1.442695, %v1173_v21 }
 0x2fa   :  { %v850_v30 = vpop.f32.mrf.mxu0 }
 0x2fb   :  { %v3922_v32 = vadd.f32 %v850_v30, %v625_v12  ;;  %3229 = vpow2.f32 %v2785_v9 }
 0x2fc   :  { %v852_v34 = vpop.f32.mrf.mxu0  ;;  %v3228_v0 = vpop.eup %3227 }
 0x2fd   :  { %v3924_v36 = vadd.f32 %v852_v34, %v629_v7 }
 0x306   :  { %v889_v38 = vpop.f32.mrf.mxu0 }
 0x307   :  { %v890_v40 = vadd.f32 %v889_v38, %v633_v2 }
 0x308   :  { %v891_v43 = vpop.f32.mrf.mxu0  ;;  %v3230_v42 = vpop.eup %3229 }
 0x30a   :  { %v893_v3 = vpop.f32.mrf.mxu0 }
 0x30b   :  { %v3932_v17 = vadd.f32 %v893_v3, %v633_v2  ;;  %v1186_v3 = vadd.f32 1.0, %v3228_v0 }
 0x30c   :  { %v895_v25 = vpop.f32.mrf.mxu0 }
 0x30d   :  { %v3934_v30 = vadd.f32 %v895_v25, %v637_v13  ;;  %v1180_v25 = vadd.f32 1.0, %v3230_v42  ;;  %3231 = vrcp.f32 %v1186_v3 }
 0x30e   :  { %v899_v34 = vpop.f32.mrf.mxu0 }
 0x30f   :  { %v3936_v7 = vadd.f32 %v899_v34, %v633_v2  ;;  %v892_v34 = vadd.f32 %v891_v43, %v637_v13  ;;  %3233 = vrcp.f32 %v1180_v25 }
 0x310   :  { %v901_v12 = vpop.f32.mrf.mxu0 }
 0x311   :  { %v3938_v5 = vadd.f32 %v901_v12, %v637_v13 }
 0x312   :  { %v903_v37 = vpop.f32.mrf.mxu0 }
 0x313   :  { %v3940_v1 = vadd.f32 %v903_v37, %v633_v2 }
 0x314   :  { %v905_v8 = vpop.f32.mrf.mxu0 }
 0x315   :  { %4624 = vst [vmem:[#allocation5_spill] sm:$0xff] %v3940_v1  ;;  %v3942_v41 = vadd.f32 %v905_v8, %v637_v13 }
 0x31a   :  { %v3232_v9 = vpop.eup %3231 }
 0x31b   :  { %v1196_v4 = vmul.f32 0.0, %v3232_v9 }
 0x31c   :  { %v3234_v8 = vpop.eup %3233 }
 0x326   :  { %v1166_v55 = vpop.f32.mrf.mxu0 }
 0x327   :  { %v1175_v21 = vadd.f32 %v1166_v55, %v890_v40 }
 0x328   :  { %v1168_v12 = vpop.f32.mrf.mxu0 }
 0x329   :  { %3235 = vtanh.f32 %v1175_v21  ;;  %v1176_v10 = vadd.f32 %v1168_v12, %v892_v34 }
 0x32a   :  { %v1170_v11 = vpop.f32.mrf.mxu0 }
 0x32b   :  { %v2787_v37 = vmul.f32 -1.442695, %v1176_v10 }
 0x32c   :  { %v1171_v6 = vpop.f32.mrf.mxu0 }
 0x32d   :  { %3237 = vpow2.f32 %v2787_v37 }
 0x336   :  { %v3236_v27 = vpop.eup %3235 }
 0x337   :  { %v1197_v1 = vmul.f32 %v3236_v27, %v3234_v8  ;;  %v4625_v27 = vmov 0  }
 0x339   :  { %v3944_v0 = vadd.f32 %v1197_v1, %v1196_v4  ;;  %v3355_v4 = vld [vmem:[%s4611_s3 + $0x404] ss:$72 sps:$4 sm:$0xff]  }
 0x33a   :  { %v3238_v38 = vpop.eup %3237 }
 0x33b   :  { %v1193_v2 = vadd.f32 1.0, %v3238_v38  ;;  %3239 = vtanh.f32 %v3944_v0 }
 0x33d   :  { %3241 = vrcp.f32 %v1193_v2 }
 0x348   :  { %v3240_v40 = vpop.eup %3239 }
 0x34a   :  { %v3242_v43 = vpop.eup %3241 }
 0x34b   :  { %v3947_v13 = vmul.f32 %v3242_v43, %v3240_v40 }
 0x34d   :  { %v1209_v6 = vpack.c.bf16 %v3947_v13, %v3947_v13 }
 0x34f   :  { %1243 = vmatmul.mubr.bf16.vlgmr.msra.gmra.mxu1 %v1209_v6  ;;  %1284 = vmatmul.mubr.bf16.vlgmr.msra.gmra.mxu0 %v1209_v6 }
 0x350   :  { %1331 = vmatpush1.bf16.msra.mxu1 %v3578_v50  ;;  %1372 = vmatpush1.bf16.msra.mxu0 %v3794_v45 }
 0x351   :  { %1332 = vmatprep.subr.bf16.mxu1 %v3583_v52  ;;  %1373 = vmatprep.subr.bf16.mxu0 %v3800_v46 }
 0x352   :  { %1362 = vmatprep.mubr.bf16.mxu1 %v4625_v27  ;;  %1403 = vmatprep.mubr.bf16.mxu0 %v4625_v27 }
 0x354   :  { %1333 = vmatpush1.bf16.msra.mxu1 %v3592_v54  ;;  %1374 = vmatpush1.bf16.msra.mxu0 %v3806_v47 }
 0x355   :  { %1334 = vmatprep.subr.bf16.mxu1 %v3598_v57  ;;  %1375 = vmatprep.subr.bf16.mxu0 %v3813_v48 }
 0x358   :  { %1335 = vmatpush1.bf16.msra.mxu1 %v3624_v14  ;;  %1376 = vmatpush1.bf16.msra.mxu0 %v3819_v49 }
 0x359   :  { %1336 = vmatprep.subr.bf16.mxu1 %v3633_v16  ;;  %1377 = vmatprep.subr.bf16.mxu0 %v3825_v51 }
 0x35c   :  { %1337 = vmatpush1.bf16.msra.mxu1 %v3641_v18  ;;  %1378 = vmatpush1.bf16.msra.mxu0 %v3831_v53 }
 0x35d   :  { %1338 = vmatprep.subr.bf16.mxu1 %v3651_v20  ;;  %1379 = vmatprep.subr.bf16.mxu0 %v3838_v56 }
 0x360   :  { %1339 = vmatpush1.bf16.msra.mxu1 %v3659_v22  ;;  %1380 = vmatpush1.bf16.msra.mxu0 %v3844_v39 }
 0x361   :  { %1340 = vmatprep.subr.bf16.mxu1 %v3669_v24  ;;  %1381 = vmatprep.subr.bf16.mxu0 %v3850_v58 }
 0x364   :  { %1341 = vmatpush1.bf16.msra.mxu1 %v3677_v26  ;;  %1382 = vmatpush1.bf16.msra.mxu0 %v3856_v59 }
 0x365   :  { %1342 = vmatprep.subr.bf16.mxu1 %v3687_v29  ;;  %1383 = vmatprep.subr.bf16.mxu0 %v3862_v60 }
 0x368   :  { %1343 = vmatpush1.bf16.msra.mxu1 %v3695_v31  ;;  %1384 = vmatpush1.bf16.msra.mxu0 %v3868_v61 }
 0x369   :  { %1344 = vmatprep.subr.bf16.mxu1 %v3705_v33  ;;  %1385 = vmatprep.subr.bf16.mxu0 %v3874_v62 }
 0x36c   :  { %1345 = vmatpush1.bf16.msra.mxu1 %v3713_v35  ;;  %1386 = vmatpush1.bf16.msra.mxu0 %v3880_v63 }
 0x36d   :  { %1450 = vmatprep.subr.bf16.mxu1 %v3355_v4  ;;  %1491 = vmatprep.subr.bf16.mxu0 %v3789_v44 }
 0x40f   :  { %v1244_v10 = vpop.f32.mrf.mxu1  ;;  %v1285_v1 = vpop.f32.mrf.mxu0 }
 0x410   :  { %v1292_v42 = vadd.f32 %v1244_v10, %v3914_v15  ;;  %v1294_v44 = vadd.f32 %v1285_v1, %v3932_v17 }
 0x411   :  { %v1246_v3 = vpop.f32.mrf.mxu1  ;;  %v1287_v25 = vpop.f32.mrf.mxu0 }
 0x412   :  { %v2788_v55 = vmul.f32 -1.442695, %v1292_v42  ;;  %v1293_v34 = vadd.f32 %v1246_v3, %v3916_v19  ;;  %v1295_v8 = vadd.f32 %v1287_v25, %v3934_v30 }
 0x413   :  { %v1248_v21 = vpop.f32.mrf.mxu1  ;;  %v1289_v12 = vpop.f32.mrf.mxu0 }
 0x414   :  { %3243 = vpow2.f32 %v2788_v55  ;;  %v2789_v11 = vmul.f32 -1.442695, %v1293_v34  ;;  %v2790_v38 = vmul.f32 -1.442695, %v1295_v8  ;;  %v3123_v21 = vld [vmem:[%s4611_s3 + $0x384] ss:$72 sps:$4 sm:$0xff]  }
 0x415   :  { %v1249_v37 = vpop.f32.mrf.mxu1  ;;  %v1290_v9 = vpop.f32.mrf.mxu0  ;;  %v3126_v12 = vld [vmem:[%s4611_s3 + $0x38c] ss:$72 sps:$4 sm:$0xff]   ;;  %v3132_v8 = vld [vmem:[%s4611_s3 + $0x2fc] ss:$72 sps:$4 sm:$0xff]  }
 0x416   :  { %3245 = vpow2.f32 %v2789_v11  ;;  %v3121_v11 = vld [vmem:[%s4611_s3 + $0x380] ss:$72 sps:$4 sm:$0xff]   ;;  %v3129_v9 = vld [vmem:[%s4611_s3 + $0x2f4] ss:$72 sps:$4 sm:$0xff]  }
 0x417   :  { %3247 = vtanh.f32 %v1294_v44  ;;  %v3124_v37 = vld [vmem:[%s4611_s3 + $0x388] ss:$72 sps:$4 sm:$0xff]  }
 0x418   :  { %3249 = vpow2.f32 %v2790_v38  ;;  %v3127_v44 = vld [vmem:[%s4611_s3 + $0x2f0] ss:$72 sps:$4 sm:$0xff]  }
 0x419   :  { %v3130_v38 = vld [vmem:[%s4611_s3 + $0x2f8] ss:$72 sps:$4 sm:$0xff]  }
 0x421   :  { %v3244_v2 = vpop.eup %3243 }
 0x422   :  { %v1299_v40 = vadd.f32 1.0, %v3244_v2  ;;  %v3135_v2 = vld [vmem:[%s4611_s3 + $0x264] ss:$72 sps:$4 sm:$0xff]  }
 0x423   :  { %v3246_v15 = vpop.eup %3245 }
 0x424   :  { %3251 = vrcp.f32 %v1299_v40  ;;  %v1305_v43 = vadd.f32 1.0, %v3246_v15  ;;  %v3248_v19 = vpop.eup %3247  ;;  %v3138_v40 = vld [vmem:[%s4611_s3 + $0x26c] ss:$72 sps:$4 sm:$0xff]   ;;  %v3133_v15 = vld [vmem:[%s4611_s3 + $0x260] ss:$72 sps:$4 sm:$0xff]  }
 0x425   :  { %v3250_v6 = vpop.eup %3249 }
 0x426   :  { %3253 = vrcp.f32 %v1305_v43  ;;  %v1312_v3 = vadd.f32 1.0, %v3250_v6  ;;  %v3136_v43 = vld [vmem:[%s4611_s3 + $0x268] ss:$72 sps:$4 sm:$0xff]   ;;  %v3144_v6 = vld [vmem:[%s4611_s3 + $0x1dc] ss:$72 sps:$4 sm:$0xff]  }
 0x428   :  { %3255 = vrcp.f32 %v1312_v3  ;;  %v3150_v3 = vld [vmem:[%s4611_s3 + $0x14c] ss:$72 sps:$4 sm:$0xff]  }
 0x431   :  { %v3252_v4 = vpop.eup %3251 }
 0x432   :  { %v1316_v10 = vmul.f32 %v3252_v4, %v3248_v19  ;;  %v3141_v19 = vld [vmem:[%s4611_s3 + $0x1d4] ss:$72 sps:$4 sm:$0xff]   ;;  %v3139_v4 = vld [vmem:[%s4611_s3 + $0x1d0] ss:$72 sps:$4 sm:$0xff]  }
 0x433   :  { %v3254_v42 = vpop.eup %3253 }
 0x434   :  { %v1315_v55 = vmul.f32 %v3254_v42, %v3944_v0  ;;  %v3147_v42 = vld [vmem:[%s4611_s3 + $0x144] ss:$72 sps:$4 sm:$0xff]  }
 0x435   :  { %v3256_v17 = vpop.eup %3255 }
 0x436   :  { %v3992_v30 = vadd.f32 %v1316_v10, %v1315_v55  ;;  %v3142_v10 = vld [vmem:[%s4611_s3 + $0x1d8] ss:$72 sps:$4 sm:$0xff]  }
 0x437   :  { %v3145_v55 = vld [vmem:[%s4611_s3 + $0x140] ss:$72 sps:$4 sm:$0xff]  }
 0x438   :  { %3257 = vtanh.f32 %v3992_v30 }
 0x445   :  { %v3258_v1 = vpop.eup %3257 }
 0x446   :  { %v3995_v25 = vmul.f32 %v3258_v1, %v3256_v17  ;;  %v3153_v17 = vld [vmem:[%s4611_s3 + $0xb4] ss:$72 sps:$4 sm:$0xff]  }
 0x447   :  { %v3156_v1 = vld [vmem:[%s4611_s3 + $0xbc] ss:$72 sps:$4 sm:$0xff]  }
 0x448   :  { %v1329_v34 = vpack.c.bf16 %v3995_v25, %v3995_v25 }
 0x44a   :  { %1363 = vmatmul.mubr.bf16.vlgmr.msra.gmra.mxu1 %v1329_v34  ;;  %1404 = vmatmul.mubr.bf16.vlgmr.msra.gmra.mxu0 %v1329_v34  ;;  %v3151_v34 = vld [vmem:[%s4611_s3 + $0xb0] ss:$72 sps:$4 sm:$0xff]  }
 0x44b   :  { %1451 = vmatpush1.bf16.msra.mxu1 %v3578_v50  ;;  %1492 = vmatpush1.bf16.msra.mxu0 %v3794_v45  ;;  %v3117_v50 = vld [vmem:[%s4611_s3 + $0x414] ss:$72 sps:$4 sm:$0xff]  }
 0x44c   :  { %1452 = vmatprep.subr.bf16.mxu1 %v3583_v52  ;;  %1493 = vmatprep.subr.bf16.mxu0 %v3800_v46  ;;  %v3120_v52 = vld [vmem:[%s4611_s3 + $0x41c] ss:$72 sps:$4 sm:$0xff]  }
 0x44d   :  { %1482 = vmatprep.mubr.bf16.mxu1 %v4625_v27  ;;  %1523 = vmatprep.mubr.bf16.mxu0 %v4625_v27 }
 0x44f   :  { %1453 = vmatpush1.bf16.msra.mxu1 %v3592_v54  ;;  %1494 = vmatpush1.bf16.msra.mxu0 %v3806_v47 }
 0x450   :  { %1454 = vmatprep.subr.bf16.mxu1 %v3598_v57  ;;  %1495 = vmatprep.subr.bf16.mxu0 %v3813_v48 }
 0x453   :  { %1455 = vmatpush1.bf16.msra.mxu1 %v3624_v14  ;;  %1496 = vmatpush1.bf16.msra.mxu0 %v3819_v49 }
 0x454   :  { %1456 = vmatprep.subr.bf16.mxu1 %v3633_v16  ;;  %1497 = vmatprep.subr.bf16.mxu0 %v3825_v51 }
 0x457   :  { %1457 = vmatpush1.bf16.msra.mxu1 %v3641_v18  ;;  %1498 = vmatpush1.bf16.msra.mxu0 %v3831_v53 }
 0x458   :  { %1458 = vmatprep.subr.bf16.mxu1 %v3651_v20  ;;  %1499 = vmatprep.subr.bf16.mxu0 %v3838_v56 }
 0x45b   :  { %1459 = vmatpush1.bf16.msra.mxu1 %v3659_v22  ;;  %1500 = vmatpush1.bf16.msra.mxu0 %v3844_v39 }
 0x45c   :  { %1460 = vmatprep.subr.bf16.mxu1 %v3669_v24  ;;  %1501 = vmatprep.subr.bf16.mxu0 %v3850_v58 }
 0x45f   :  { %1461 = vmatpush1.bf16.msra.mxu1 %v3677_v26  ;;  %1502 = vmatpush1.bf16.msra.mxu0 %v3856_v59 }
 0x460   :  { %1462 = vmatprep.subr.bf16.mxu1 %v3687_v29  ;;  %1503 = vmatprep.subr.bf16.mxu0 %v3862_v60 }
 0x463   :  { %1463 = vmatpush1.bf16.msra.mxu1 %v3695_v31  ;;  %1504 = vmatpush1.bf16.msra.mxu0 %v3868_v61 }
 0x464   :  { %1464 = vmatprep.subr.bf16.mxu1 %v3705_v33  ;;  %1505 = vmatprep.subr.bf16.mxu0 %v3874_v62 }
 0x467   :  { %1465 = vmatpush1.bf16.msra.mxu1 %v3713_v35  ;;  %1506 = vmatpush1.bf16.msra.mxu0 %v3880_v63 }
 0x468   :  { %1749 = vmatprep.subr.bf16.mxu1 %v3117_v50  ;;  %1802 = vmatprep.subr.bf16.mxu0 %v3120_v52  ;;  %v3154_v50 = vld [vmem:[%s4611_s3 + $0xb8] ss:$72 sps:$4 sm:$0xff]   ;;  %v3159_v52 = vld [vmem:[%s4611_s3 + $0x24] ss:$72 sps:$4 sm:$0xff]  }
 0x50a   :  { %v1364_v54 = vpop.f32.mrf.mxu1  ;;  %v1405_v57 = vpop.f32.mrf.mxu0 }
 0x50b   :  { %v1412_v14 = vadd.f32 %v1364_v54, %v3918_v23  ;;  %v1414_v45 = vadd.f32 %v1405_v57, %v3936_v7  ;;  %v3118_v7 = vld [vmem:[%s4611_s3 + $0x418] ss:$72 sps:$4 sm:$0xff]   ;;  %v3162_v54 = vld [vmem:[%s4611_s3 + $0x2c] ss:$72 sps:$4 sm:$0xff]  }
 0x50c   :  { %v1366_v16 = vpop.f32.mrf.mxu1  ;;  %v1407_v18 = vpop.f32.mrf.mxu0  ;;  %v3157_v57 = vld [vmem:[%s4611_s3 + $0x20] ss:$72 sps:$4 sm:$0xff]  }
 0x50d   :  { %v2791_v20 = vmul.f32 -1.442695, %v1412_v14  ;;  %v1413_v22 = vadd.f32 %v1366_v16, %v3920_v28  ;;  %v1415_v35 = vadd.f32 %v1407_v18, %v3938_v5  ;;  %v3115_v28 = vld [vmem:[%s4611_s3 + $0x410] ss:$72 sps:$4 sm:$0xff]   ;;  %v1566_v16 = vpack.c.bf16 %v3995_v25, %v3947_v13  ;;  %v4148_v18 = vld [vmem:[%s4611_s3 + $0x424] ss:$72 sps:$4 sm:$0xff]  }
 0x50e   :  { %v1368_v24 = vpop.f32.mrf.mxu1  ;;  %v1409_v26 = vpop.f32.mrf.mxu0  ;;  %v3160_v14 = vld [vmem:[%s4611_s3 + $0x28] ss:$72 sps:$4 sm:$0xff]  }
 0x50f   :  { %3259 = vpow2.f32 %v2791_v20  ;;  %v2792_v29 = vmul.f32 -1.442695, %v1413_v22  ;;  %v2793_v46 = vmul.f32 -1.442695, %v1415_v35  ;;  %v4153_v20 = vld [vmem:[%s4611_s3 + $0x42c] ss:$72 sps:$4 sm:$0xff]  }
 0x510   :  { %v1369_v31 = vpop.f32.mrf.mxu1  ;;  %v1410_v33 = vpop.f32.mrf.mxu0  ;;  %v4158_v13 = vld [vmem:[%s4611_s3 + $0x420] ss:$72 sps:$4 sm:$0xff]   ;;  %v4172_v22 = vld [vmem:[%s4611_s3 + $0x394] ss:$72 sps:$4 sm:$0xff]   ;;  %v4182_v26 = vld [vmem:[%s4611_s3 + $0x390] ss:$72 sps:$4 sm:$0xff]  }
 0x511   :  { %3261 = vpow2.f32 %v2792_v29  ;;  %v4163_v25 = vld [vmem:[%s4611_s3 + $0x428] ss:$72 sps:$4 sm:$0xff]   ;;  %v4177_v24 = vld [vmem:[%s4611_s3 + $0x39c] ss:$72 sps:$4 sm:$0xff]   ;;  %v4187_v29 = vld [vmem:[%s4611_s3 + $0x398] ss:$72 sps:$4 sm:$0xff]  }
 0x512   :  { %3263 = vtanh.f32 %v1414_v45  ;;  %v4192_v31 = vld [vmem:[%s4611_s3 + $0x304] ss:$72 sps:$4 sm:$0xff]   ;;  %v4206_v35 = vld [vmem:[%s4611_s3 + $0x300] ss:$72 sps:$4 sm:$0xff]  }
 0x513   :  { %3265 = vpow2.f32 %v2793_v46  ;;  %v4199_v33 = vld [vmem:[%s4611_s3 + $0x30c] ss:$72 sps:$4 sm:$0xff]   ;;  %v4211_v45 = vld [vmem:[%s4611_s3 + $0x308] ss:$72 sps:$4 sm:$0xff]  }
 0x514   :  { %v4218_v46 = vld [vmem:[%s4611_s3 + $0x274] ss:$72 sps:$4 sm:$0xff]  }
 0x51c   :  { %v3260_v47 = vpop.eup %3259 }
 0x51d   :  { %v1419_v48 = vadd.f32 1.0, %v3260_v47  ;;  %v4223_v47 = vld [vmem:[%s4611_s3 + $0x27c] ss:$72 sps:$4 sm:$0xff]  }
 0x51e   :  { %v3262_v49 = vpop.eup %3261 }
 0x51f   :  { %3267 = vrcp.f32 %v1419_v48  ;;  %v1425_v51 = vadd.f32 1.0, %v3262_v49  ;;  %v3264_v53 = vpop.eup %3263  ;;  %v4230_v48 = vld [vmem:[%s4611_s3 + $0x270] ss:$72 sps:$4 sm:$0xff]  }
 0x520   :  { %v3266_v56 = vpop.eup %3265  ;;  %v4235_v49 = vld [vmem:[%s4611_s3 + $0x278] ss:$72 sps:$4 sm:$0xff]  }
 0x521   :  { %3269 = vrcp.f32 %v1425_v51  ;;  %v1432_v60 = vadd.f32 1.0, %v3266_v56  ;;  %v4242_v51 = vld [vmem:[%s4611_s3 + $0x1e4] ss:$72 sps:$4 sm:$0xff]   ;;  %v4254_v56 = vld [vmem:[%s4611_s3 + $0x1e0] ss:$72 sps:$4 sm:$0xff]  }
 0x523   :  { %3271 = vrcp.f32 %v1432_v60  ;;  %v4278_v60 = vld [vmem:[%s4611_s3 + $0x150] ss:$72 sps:$4 sm:$0xff]  }
 0x52c   :  { %v3268_v39 = vpop.eup %3267 }
 0x52d   :  { %v1436_v58 = vmul.f32 %v3268_v39, %v3264_v53  ;;  %v4247_v53 = vld [vmem:[%s4611_s3 + $0x1ec] ss:$72 sps:$4 sm:$0xff]   ;;  %v4259_v39 = vld [vmem:[%s4611_s3 + $0x1e8] ss:$72 sps:$4 sm:$0xff]  }
 0x52e   :  { %v3270_v59 = vpop.eup %3269 }
 0x52f   :  { %v1435_v61 = vmul.f32 %v3270_v59, %v3992_v30  ;;  %v3148_v30 = vld [vmem:[%s4611_s3 + $0x148] ss:$72 sps:$4 sm:$0xff]   ;;  %v4271_v59 = vld [vmem:[%s4611_s3 + $0x15c] ss:$72 sps:$4 sm:$0xff]  }
 0x530   :  { %v3272_v62 = vpop.eup %3271 }
 0x531   :  { %v4042_v5 = vadd.f32 %v1436_v58, %v1435_v61  ;;  %v4266_v58 = vld [vmem:[%s4611_s3 + $0x154] ss:$72 sps:$4 sm:$0xff]   ;;  %v4283_v61 = vld [vmem:[%s4611_s3 + $0x158] ss:$72 sps:$4 sm:$0xff]  }
 0x533   :  { %3273 = vtanh.f32 %v4042_v5 }
 0x540   :  { %v3274_v63 = vpop.eup %3273 }
 0x541   :  { %v4045_v23 = vmul.f32 %v3274_v63, %v3272_v62  ;;  %v4292_v62 = vld [vmem:[%s4611_s3 + $0xc4] ss:$72 sps:$4 sm:$0xff]  }
 0x542   :  { %v4297_v63 = vld [vmem:[%s4611_s3 + $0xcc] ss:$72 sps:$4 sm:$0xff]  }
 0x543   :  { %v1449_v0 = vpack.c.bf16 %v4045_v23, %v4045_v23 }
 0x545   :  { %1483 = vmatmul.mubr.bf16.vlgmr.msra.gmra.mxu1 %v1449_v0  ;;  %1524 = vmatmul.mubr.bf16.vlgmr.msra.gmra.mxu0 %v1449_v0  ;;  %v4312_v0 = vld [vmem:[%s4611_s3 + $0x34] ss:$72 sps:$4 sm:$0xff]  }
 0x546   :  { %1750 = vmatpush1.bf16.msra.mxu1 %v3115_v28  ;;  %1803 = vmatpush1.bf16.msra.mxu0 %v3118_v7  ;;  %v4302_v28 = vld [vmem:[%s4611_s3 + $0xc0] ss:$72 sps:$4 sm:$0xff]  }
 0x547   :  { %1751 = vmatprep.subr.bf16.mxu1 %v3123_v21  ;;  %1804 = vmatprep.subr.bf16.mxu0 %v3126_v12  ;;  %v4307_v7 = vld [vmem:[%s4611_s3 + $0xc8] ss:$72 sps:$4 sm:$0xff]   ;;  %v4319_v21 = vld [vmem:[%s4611_s3 + $0x3c] ss:$72 sps:$4 sm:$0xff]  }
 0x548   :  { %1781 = vmatprep.mubr.bf16.mxu1 %v4625_v27  ;;  %1834 = vmatprep.mubr.bf16.mxu0 %v4625_v27  ;;  %v4326_v12 = vld [vmem:[%s4611_s3 + $0x30] ss:$72 sps:$4 sm:$0xff]  }
 0x54a   :  { %1752 = vmatpush1.bf16.msra.mxu1 %v3121_v11  ;;  %1805 = vmatpush1.bf16.msra.mxu0 %v3124_v37  ;;  %v4331_v11 = vld [vmem:[%s4611_s3 + $0x38] ss:$72 sps:$4 sm:$0xff]  }
 0x54b   :  { %1753 = vmatprep.subr.bf16.mxu1 %v3129_v9  ;;  %1806 = vmatprep.subr.bf16.mxu0 %v3132_v8 }
 0x54e   :  { %1754 = vmatpush1.bf16.msra.mxu1 %v3127_v44  ;;  %1807 = vmatpush1.bf16.msra.mxu0 %v3130_v38 }
 0x54f   :  { %1755 = vmatprep.subr.bf16.mxu1 %v3135_v2  ;;  %1808 = vmatprep.subr.bf16.mxu0 %v3138_v40 }
 0x552   :  { %1756 = vmatpush1.bf16.msra.mxu1 %v3133_v15  ;;  %1809 = vmatpush1.bf16.msra.mxu0 %v3136_v43 }
 0x553   :  { %1757 = vmatprep.subr.bf16.mxu1 %v3141_v19  ;;  %1810 = vmatprep.subr.bf16.mxu0 %v3144_v6 }
 0x556   :  { %1758 = vmatpush1.bf16.msra.mxu1 %v3139_v4  ;;  %1811 = vmatpush1.bf16.msra.mxu0 %v3142_v10 }
 0x557   :  { %1759 = vmatprep.subr.bf16.mxu1 %v3147_v42  ;;  %1812 = vmatprep.subr.bf16.mxu0 %v3150_v3  ;;  %v4626_v42 = vld [vmem:[#allocation5_spill] sm:$0xff] }
 0x55a   :  { %1760 = vmatpush1.bf16.msra.mxu1 %v3145_v55  ;;  %1813 = vmatpush1.bf16.msra.mxu0 %v3148_v30 }
 0x55b   :  { %1761 = vmatprep.subr.bf16.mxu1 %v3153_v17  ;;  %1814 = vmatprep.subr.bf16.mxu0 %v3156_v1 }
 0x55e   :  { %1762 = vmatpush1.bf16.msra.mxu1 %v3151_v34  ;;  %1815 = vmatpush1.bf16.msra.mxu0 %v3154_v50 }
 0x55f   :  { %1763 = vmatprep.subr.bf16.mxu1 %v3159_v52  ;;  %1816 = vmatprep.subr.bf16.mxu0 %v3162_v54 }
 0x562   :  { %1764 = vmatpush1.bf16.msra.mxu1 %v3157_v57  ;;  %1817 = vmatpush1.bf16.msra.mxu0 %v3160_v14 }
 0x563   :  { %2035 = vmatprep.subr.bf16.mxu1 %v4148_v18  ;;  %2076 = vmatprep.subr.bf16.mxu0 %v4153_v20 }
 0x565   :  { %1782 = vmatmul.mubr.bf16.vlgmr.msra.gmra.mxu1 %v1566_v16  ;;  %1835 = vmatmul.mubr.bf16.vlgmr.msra.gmra.mxu0 %v1566_v16 }
 0x566   :  { %1791 = vmatprep.mubr.bf16.mxu1 %v4625_v27  ;;  %1844 = vmatprep.mubr.bf16.mxu0 %v4625_v27 }
 0x567   :  { %2036 = vmatpush1.bf16.msra.mxu1 %v4158_v13  ;;  %2077 = vmatpush1.bf16.msra.mxu0 %v4163_v25 }
 0x568   :  { %2037 = vmatprep.subr.bf16.mxu1 %v4172_v22  ;;  %2078 = vmatprep.subr.bf16.mxu0 %v4177_v24 }
 0x56b   :  { %2038 = vmatpush1.bf16.msra.mxu1 %v4182_v26  ;;  %2079 = vmatpush1.bf16.msra.mxu0 %v4187_v29 }
 0x56c   :  { %2039 = vmatprep.subr.bf16.mxu1 %v4192_v31  ;;  %2080 = vmatprep.subr.bf16.mxu0 %v4199_v33 }
 0x56f   :  { %2040 = vmatpush1.bf16.msra.mxu1 %v4206_v35  ;;  %2081 = vmatpush1.bf16.msra.mxu0 %v4211_v45 }
 0x570   :  { %2041 = vmatprep.subr.bf16.mxu1 %v4218_v46  ;;  %2082 = vmatprep.subr.bf16.mxu0 %v4223_v47 }
 0x573   :  { %2042 = vmatpush1.bf16.msra.mxu1 %v4230_v48  ;;  %2083 = vmatpush1.bf16.msra.mxu0 %v4235_v49 }
 0x574   :  { %2043 = vmatprep.subr.bf16.mxu1 %v4242_v51  ;;  %2084 = vmatprep.subr.bf16.mxu0 %v4247_v53 }
 0x577   :  { %2044 = vmatpush1.bf16.msra.mxu1 %v4254_v56  ;;  %2085 = vmatpush1.bf16.msra.mxu0 %v4259_v39 }
 0x578   :  { %2045 = vmatprep.subr.bf16.mxu1 %v4266_v58  ;;  %2086 = vmatprep.subr.bf16.mxu0 %v4271_v59 }
 0x57b   :  { %2046 = vmatpush1.bf16.msra.mxu1 %v4278_v60  ;;  %2087 = vmatpush1.bf16.msra.mxu0 %v4283_v61 }
 0x57c   :  { %2047 = vmatprep.subr.bf16.mxu1 %v4292_v62  ;;  %2088 = vmatprep.subr.bf16.mxu0 %v4297_v63 }
 0x57f   :  { %2048 = vmatpush1.bf16.msra.mxu1 %v4302_v28  ;;  %2089 = vmatpush1.bf16.msra.mxu0 %v4307_v7 }
 0x580   :  { %2049 = vmatprep.subr.bf16.mxu1 %v4312_v0  ;;  %2090 = vmatprep.subr.bf16.mxu0 %v4319_v21 }
 0x583   :  { %2050 = vmatpush1.bf16.msra.mxu1 %v4326_v12  ;;  %2091 = vmatpush1.bf16.msra.mxu0 %v4331_v11 }
 0x584   :  { %2150 = vmatprep.subr.bf16.mxu1 %v4148_v18  ;;  %2191 = vmatprep.subr.bf16.mxu0 %v4153_v20 }
 0x605   :  { %v1484_v37 = vpop.f32.mrf.mxu1  ;;  %v1525_v9 = vpop.f32.mrf.mxu0 }
 0x606   :  { %v1532_v8 = vadd.f32 %v1484_v37, %v3922_v32  ;;  %v1534_v3 = vadd.f32 %v1525_v9, %v4626_v42 }
 0x607   :  { %v1486_v44 = vpop.f32.mrf.mxu1  ;;  %v1527_v38 = vpop.f32.mrf.mxu0 }
 0x608   :  { %v2794_v2 = vmul.f32 -1.442695, %v1532_v8  ;;  %v1533_v40 = vadd.f32 %v1486_v44, %v3924_v36  ;;  %v1535_v10 = vadd.f32 %v1527_v38, %v3942_v41 }
 0x609   :  { %v1488_v15 = vpop.f32.mrf.mxu1  ;;  %v1529_v43 = vpop.f32.mrf.mxu0 }
 0x60a   :  { %3275 = vpow2.f32 %v2794_v2  ;;  %v2795_v19 = vmul.f32 -1.442695, %v1533_v40  ;;  %v2796_v55 = vmul.f32 -1.442695, %v1535_v10 }
 0x60b   :  { %v1489_v6 = vpop.f32.mrf.mxu1  ;;  %v1530_v4 = vpop.f32.mrf.mxu0 }
 0x60c   :  { %3277 = vpow2.f32 %v2795_v19  ;;  %v182_v19 = vld [vmem:[%s4610_s4 + $0x4] sm:$0xf] }
 0x60d   :  { %3279 = vtanh.f32 %v1534_v3  ;;  %v4628_v3 = vld [vmem:[#allocation4_spill] sm:$0xff] }
 0x60e   :  { %3281 = vpow2.f32 %v2796_v55  ;;  %v4629_v55 = vsub.s32 0, %v4628_v3 }
 0x617   :  { %v3276_v30 = vpop.eup %3275 }
 0x618   :  { %v1539_v17 = vadd.f32 1.0, %v3276_v30  ;;  %v4404_v30 = vrot.slane %v182_v19, %v4629_v55 }
 0x619   :  { %v3278_v32 = vpop.eup %3277 }
 0x61a   :  { %3283 = vrcp.f32 %v1539_v17  ;;  %v1545_v1 = vadd.f32 1.0, %v3278_v32  ;;  %v3280_v36 = vpop.eup %3279 }
 0x61b   :  { %v3282_v34 = vpop.eup %3281 }
 0x61c   :  { %3285 = vrcp.f32 %v1545_v1  ;;  %v1552_v57 = vadd.f32 1.0, %v3282_v34  ;;  %v4632_v1 = vsub.s32 1, %v4628_v3 }
 0x61e   :  { %3287 = vrcp.f32 %v1552_v57 }
 0x627   :  { %v3284_v50 = vpop.eup %3283 }
 0x628   :  { %v1556_v52 = vmul.f32 %v3284_v50, %v3280_v36  ;;  %v4412_v36 = vrot.slane %v182_v19, %v4632_v1 }
 0x629   :  { %v3286_v54 = vpop.eup %3285 }
 0x62a   :  { %v1555_v14 = vmul.f32 %v3286_v54, %v4042_v5  ;;  %v1783_v5 = vpop.f32.mrf.mxu1 }
 0x62b   :  { %v3288_v16 = vpop.eup %3287 }
 0x62c   :  { %v1557_v41 = vadd.f32 %v1556_v52, %v1555_v14  ;;  %v1785_v44 = vpop.f32.mrf.mxu1  ;;  %v1784_v52 = vadd.f32 %v1783_v5, %v4404_v30 }
 0x62d   :  { %v1786_v14 = vadd.f32 %v1785_v44, %v4412_v36  ;;  %v4636_v44 = vsub.s32 2, %v4628_v3 }
 0x62e   :  { %3289 = vtanh.f32 %v1557_v41  ;;  %v4383_v2 = vpop.f32.mrf.mxu1 }
 0x630   :  { %v4387_v15 = vpop.f32.mrf.mxu1 }
 0x63b   :  { %v3290_v37 = vpop.eup %3289 }
 0x63c   :  { %v1559_v9 = vmul.f32 %v3290_v37, %v3288_v16 }
 0x63e   :  { %v1567_v8 = vpack.c.bf16 %v1559_v9, %v4045_v23  ;;  %v1836_v23 = vpop.f32.mrf.mxu0 }
 0x640   :  { %1792 = vmatmul.mubr.bf16.gmra.mxu1 %v1567_v8  ;;  %1845 = vmatmul.mubr.bf16.gmra.mxu0 %v1567_v8  ;;  %v1838_v38 = vpop.f32.mrf.mxu0 }
 0x641   :  { %2067 = vmatprep.mubr.bf16.mxu1 %v4625_v27  ;;  %2108 = vmatprep.mubr.bf16.mxu0 %v4625_v27 }
 0x642   :  { %v4385_v40 = vpop.f32.mrf.mxu0 }
 0x644   :  { %v4389_v43 = vpop.f32.mrf.mxu0 }
 0x648   :  { %2068 = vmatmul.mubr.bf16.vlgmr.msra.gmra.mxu1 %v4625_v27  ;;  %2109 = vmatmul.mubr.bf16.vlgmr.msra.gmra.mxu0 %v4625_v27 }
 0x649   :  { %2151 = vmatpush1.bf16.msra.mxu1 %v4158_v13  ;;  %2192 = vmatpush1.bf16.msra.mxu0 %v4163_v25 }
 0x64a   :  { %2152 = vmatprep.subr.bf16.mxu1 %v4172_v22  ;;  %2193 = vmatprep.subr.bf16.mxu0 %v4177_v24 }
 0x64b   :  { %2182 = vmatprep.mubr.bf16.mxu1 %v4625_v27  ;;  %2223 = vmatprep.mubr.bf16.mxu0 %v4625_v27 }
 0x64d   :  { %2153 = vmatpush1.bf16.msra.mxu1 %v4182_v26  ;;  %2194 = vmatpush1.bf16.msra.mxu0 %v4187_v29 }
 0x64e   :  { %2154 = vmatprep.subr.bf16.mxu1 %v4192_v31  ;;  %2195 = vmatprep.subr.bf16.mxu0 %v4199_v33 }
 0x651   :  { %2155 = vmatpush1.bf16.msra.mxu1 %v4206_v35  ;;  %2196 = vmatpush1.bf16.msra.mxu0 %v4211_v45 }
 0x652   :  { %2156 = vmatprep.subr.bf16.mxu1 %v4218_v46  ;;  %2197 = vmatprep.subr.bf16.mxu0 %v4223_v47 }
 0x655   :  { %2157 = vmatpush1.bf16.msra.mxu1 %v4230_v48  ;;  %2198 = vmatpush1.bf16.msra.mxu0 %v4235_v49 }
 0x656   :  { %2158 = vmatprep.subr.bf16.mxu1 %v4242_v51  ;;  %2199 = vmatprep.subr.bf16.mxu0 %v4247_v53 }
 0x659   :  { %2159 = vmatpush1.bf16.msra.mxu1 %v4254_v56  ;;  %2200 = vmatpush1.bf16.msra.mxu0 %v4259_v39 }
 0x65a   :  { %2160 = vmatprep.subr.bf16.mxu1 %v4266_v58  ;;  %2201 = vmatprep.subr.bf16.mxu0 %v4271_v59 }
 0x65d   :  { %2161 = vmatpush1.bf16.msra.mxu1 %v4278_v60  ;;  %2202 = vmatpush1.bf16.msra.mxu0 %v4283_v61 }
 0x65e   :  { %2162 = vmatprep.subr.bf16.mxu1 %v4292_v62  ;;  %2203 = vmatprep.subr.bf16.mxu0 %v4297_v63 }
 0x661   :  { %2163 = vmatpush1.bf16.msra.mxu1 %v4302_v28  ;;  %2204 = vmatpush1.bf16.msra.mxu0 %v4307_v7 }
 0x662   :  { %2164 = vmatprep.subr.bf16.mxu1 %v4312_v0  ;;  %2205 = vmatprep.subr.bf16.mxu0 %v4319_v21 }
 0x665   :  { %2165 = vmatpush1.bf16.msra.mxu1 %v4326_v12  ;;  %2206 = vmatpush1.bf16.msra.mxu0 %v4331_v11 }
 0x666   :  { %2265 = vmatprep.subr.bf16.mxu1 %v4148_v18  ;;  %2306 = vmatprep.subr.bf16.mxu0 %v4153_v20 }
 0x700   :  { %v4394_v6 = vpop.f32.mrf.mxu1  ;;  %v4396_v4 = vpop.f32.mrf.mxu0 }
 0x701   :  { %4627 = vst [vmem:[#allocation5_spill] sm:$0xff] %v4396_v4 }
 0x702   :  { %v4398_v10 = vpop.f32.mrf.mxu1  ;;  %v4400_v42 = vpop.f32.mrf.mxu0 }
 0x704   :  { %v4406_v17 = vpop.f32.mrf.mxu1  ;;  %v4408_v32 = vpop.f32.mrf.mxu0 }
 0x705   :  { %4630 = vst [vmem:[#allocation4_spill] sm:$0xff] %v4406_v17  ;;  %4631 = vst [vmem:[#allocation6_spill] sm:$0xff] %v4408_v32  ;;  %v4635_v17 = vsub.s32 3, %v4628_v3 }
 0x706   :  { %v4414_v34 = vpop.f32.mrf.mxu1  ;;  %v4416_v50 = vpop.f32.mrf.mxu0 }
 0x707   :  { %4633 = vst [vmem:[#allocation7_spill] sm:$0xff] %v4414_v34  ;;  %4634 = vst [vmem:[#allocation8_spill] sm:$0xff] %v4416_v50  ;;  %v4422_v34 = vrot.slane %v182_v19, %v4635_v17 }
 0x708   :  { %v2069_v54 = vpop.f32.mrf.mxu1  ;;  %v2110_v57 = vpop.f32.mrf.mxu0 }
 0x709   :  { %v2117_v41 = vadd.f32 %v2069_v54, %v1784_v52  ;;  %v1839_v5 = vadd.f32 %v1838_v38, %v4422_v34  ;;  %v4427_v52 = vrot.slane %v182_v19, %v4636_v44 }
 0x70a   :  { %v2071_v16 = vpop.f32.mrf.mxu1  ;;  %v2112_v37 = vpop.f32.mrf.mxu0 }
 0x70b   :  { %v2861_v9 = vmul.f32 -1.442695, %v2117_v41  ;;  %v2118_v8 = vadd.f32 %v2071_v16, %v1786_v14  ;;  %v2120_v54 = vadd.f32 %v2112_v37, %v1839_v5  ;;  %v1837_v14 = vadd.f32 %v1836_v23, %v4427_v52 }
 0x70c   :  { %v2073_v55 = vpop.f32.mrf.mxu1  ;;  %v2114_v32 = vpop.f32.mrf.mxu0 }
 0x70d   :  { %3291 = vpow2.f32 %v2861_v9  ;;  %v2862_v1 = vmul.f32 -1.442695, %v2118_v8  ;;  %v2863_v41 = vmul.f32 -1.442695, %v2120_v54  ;;  %v2119_v16 = vadd.f32 %v2110_v57, %v1837_v14 }
 0x70e   :  { %v2074_v50 = vpop.f32.mrf.mxu1  ;;  %v2115_v4 = vpop.f32.mrf.mxu0  ;;  %v1788_v54 = vadd.f32 %v4383_v2, %v4404_v30 }
 0x70f   :  { %3293 = vpow2.f32 %v2862_v1 }
 0x710   :  { %3295 = vpow2.f32 %v2863_v41 }
 0x71a   :  { %v3292_v32 = vpop.eup %3291 }
 0x71b   :  { %v2124_v9 = vadd.f32 1.0, %v3292_v32  ;;  %v1790_v32 = vadd.f32 %v4387_v15, %v4412_v36 }
 0x71c   :  { %v3294_v8 = vpop.eup %3293 }
 0x71d   :  { %3297 = vrcp.f32 %v2124_v9  ;;  %v2130_v17 = vadd.f32 1.0, %v3294_v8  ;;  %v3296_v4 = vpop.eup %3295 }
 0x71e   :  { %3299 = vtanh.f32 %v2119_v16  ;;  %v2137_v3 = vadd.f32 1.0, %v3296_v4 }
 0x71f   :  { %3301 = vrcp.f32 %v2130_v17 }
 0x720   :  { %3303 = vrcp.f32 %v2137_v3 }
 0x72a   :  { %v3298_v50 = vpop.eup %3297 }
 0x72b   :  { %v3300_v38 = vpop.eup %3299 }
 0x72c   :  { %v3302_v55 = vpop.eup %3301  ;;  %v2141_v1 = vmul.f32 %v3300_v38, %v3298_v50 }
 0x72d   :  { %v2140_v19 = vmul.f32 0.0, %v3302_v55  ;;  %v3304_v23 = vpop.eup %3303 }
 0x72f   :  { %v4430_v37 = vadd.f32 %v2141_v1, %v2140_v19  ;;  %v1841_v19 = vadd.f32 %v4385_v40, %v4427_v52 }
 0x731   :  { %3305 = vtanh.f32 %v4430_v37 }
 0x73e   :  { %v3306_v57 = vpop.eup %3305 }
 0x73f   :  { %v2144_v5 = vmul.f32 %v3306_v57, %v3304_v23 }
 0x741   :  { %v2149_v44 = vpack.c.bf16 %v2144_v5, %v2144_v5 }
 0x743   :  { %2183 = vmatmul.mubr.bf16.vlgmr.msra.gmra.mxu1 %v2149_v44  ;;  %2224 = vmatmul.mubr.bf16.vlgmr.msra.gmra.mxu0 %v2149_v44 }
 0x744   :  { %2266 = vmatpush1.bf16.msra.mxu1 %v4158_v13  ;;  %2307 = vmatpush1.bf16.msra.mxu0 %v4163_v25 }
 0x745   :  { %2267 = vmatprep.subr.bf16.mxu1 %v4172_v22  ;;  %2308 = vmatprep.subr.bf16.mxu0 %v4177_v24 }
 0x746   :  { %2297 = vmatprep.mubr.bf16.mxu1 %v4625_v27  ;;  %2338 = vmatprep.mubr.bf16.mxu0 %v4625_v27 }
 0x748   :  { %2268 = vmatpush1.bf16.msra.mxu1 %v4182_v26  ;;  %2309 = vmatpush1.bf16.msra.mxu0 %v4187_v29 }
 0x749   :  { %2269 = vmatprep.subr.bf16.mxu1 %v4192_v31  ;;  %2310 = vmatprep.subr.bf16.mxu0 %v4199_v33 }
 0x74c   :  { %2270 = vmatpush1.bf16.msra.mxu1 %v4206_v35  ;;  %2311 = vmatpush1.bf16.msra.mxu0 %v4211_v45 }
 0x74d   :  { %2271 = vmatprep.subr.bf16.mxu1 %v4218_v46  ;;  %2312 = vmatprep.subr.bf16.mxu0 %v4223_v47 }
 0x750   :  { %2272 = vmatpush1.bf16.msra.mxu1 %v4230_v48  ;;  %2313 = vmatpush1.bf16.msra.mxu0 %v4235_v49 }
 0x751   :  { %2273 = vmatprep.subr.bf16.mxu1 %v4242_v51  ;;  %2314 = vmatprep.subr.bf16.mxu0 %v4247_v53 }
 0x754   :  { %2274 = vmatpush1.bf16.msra.mxu1 %v4254_v56  ;;  %2315 = vmatpush1.bf16.msra.mxu0 %v4259_v39 }
 0x755   :  { %2275 = vmatprep.subr.bf16.mxu1 %v4266_v58  ;;  %2316 = vmatprep.subr.bf16.mxu0 %v4271_v59 }
 0x758   :  { %2276 = vmatpush1.bf16.msra.mxu1 %v4278_v60  ;;  %2317 = vmatpush1.bf16.msra.mxu0 %v4283_v61 }
 0x759   :  { %2277 = vmatprep.subr.bf16.mxu1 %v4292_v62  ;;  %2318 = vmatprep.subr.bf16.mxu0 %v4297_v63 }
 0x75c   :  { %2278 = vmatpush1.bf16.msra.mxu1 %v4302_v28  ;;  %2319 = vmatpush1.bf16.msra.mxu0 %v4307_v7 }
 0x75d   :  { %2279 = vmatprep.subr.bf16.mxu1 %v4312_v0  ;;  %2320 = vmatprep.subr.bf16.mxu0 %v4319_v21 }
 0x760   :  { %2280 = vmatpush1.bf16.msra.mxu1 %v4326_v12  ;;  %2321 = vmatpush1.bf16.msra.mxu0 %v4331_v11 }
 0x761   :  { %2380 = vmatprep.subr.bf16.mxu1 %v4148_v18  ;;  %2421 = vmatprep.subr.bf16.mxu0 %v4153_v20  ;;  %v1843_v20 = vadd.f32 %v4389_v43, %v4422_v34 }
 0x803   :  { %v2184_v14 = vpop.f32.mrf.mxu1  ;;  %v2225_v41 = vpop.f32.mrf.mxu0 }
 0x804   :  { %v2232_v16 = vadd.f32 %v2184_v14, %v1788_v54  ;;  %v2234_v15 = vadd.f32 %v2225_v41, %v1841_v19  ;;  %v3215_v19 = vld [vmem:[%s4611_s3 + $0x1f0] ss:$72 sps:$4 sm:$0xff]  }
 0x805   :  { %v2186_v9 = vpop.f32.mrf.mxu1  ;;  %v2227_v8 = vpop.f32.mrf.mxu0 }
 0x806   :  { %v2864_v17 = vmul.f32 -1.442695, %v2232_v16  ;;  %v2233_v4 = vadd.f32 %v2186_v9, %v1790_v32  ;;  %v2235_v2 = vadd.f32 %v2227_v8, %v1843_v20  ;;  %v3213_v20 = vld [vmem:[%s4611_s3 + $0x310] ss:$72 sps:$4 sm:$0xff]  }
 0x807   :  { %v2188_v50 = vpop.f32.mrf.mxu1  ;;  %v2229_v38 = vpop.f32.mrf.mxu0 }
 0x808   :  { %3307 = vpow2.f32 %v2864_v17  ;;  %v2865_v55 = vmul.f32 -1.442695, %v2233_v4  ;;  %v2866_v1 = vmul.f32 -1.442695, %v2235_v2  ;;  %v3214_v2 = vld [vmem:[%s4611_s3 + $0x280] ss:$72 sps:$4 sm:$0xff]  }
 0x809   :  { %v2189_v18 = vpop.f32.mrf.mxu1  ;;  %v2230_v3 = vpop.f32.mrf.mxu0 }
 0x80a   :  { %3309 = vpow2.f32 %v2865_v55  ;;  %v3211_v18 = vld [vmem:[%s4611_s3 + $0x430] ss:$72 sps:$4 sm:$0xff]   ;;  %v3212_v3 = vld [vmem:[%s4611_s3 + $0x3a0] ss:$72 sps:$4 sm:$0xff]  }
 0x80b   :  { %3311 = vtanh.f32 %v2234_v15  ;;  %v3216_v15 = vld [vmem:[%s4611_s3 + $0x160] ss:$72 sps:$4 sm:$0xff]  }
 0x80c   :  { %3313 = vpow2.f32 %v2866_v1  ;;  %v3217_v1 = vld [vmem:[%s4611_s3 + $0xd0] ss:$72 sps:$4 sm:$0xff]  }
 0x815   :  { %v3308_v23 = vpop.eup %3307 }
 0x816   :  { %v2239_v57 = vadd.f32 1.0, %v3308_v23  ;;  %v3218_v23 = vld [vmem:[%s4611_s3 + $0x40] ss:$72 sps:$4 sm:$0xff]  }
 0x817   :  { %v3310_v5 = vpop.eup %3309 }
 0x818   :  { %3315 = vrcp.f32 %v2239_v57  ;;  %v2245_v44 = vadd.f32 1.0, %v3310_v5  ;;  %v3312_v54 = vpop.eup %3311  ;;  %v3219_v57 = vld [vmem:[%s4611_s3 + $0x434] ss:$72 sps:$4 sm:$0xff]   ;;  %v3220_v5 = vld [vmem:[%s4611_s3 + $0x3a4] ss:$72 sps:$4 sm:$0xff]  }
 0x819   :  { %v3314_v14 = vpop.eup %3313 }
 0x81a   :  { %3317 = vrcp.f32 %v2245_v44  ;;  %v2252_v43 = vadd.f32 1.0, %v3314_v14  ;;  %v3221_v44 = vld [vmem:[%s4611_s3 + $0x314] ss:$72 sps:$4 sm:$0xff]  }
 0x81b   :  { %v3223_v14 = vld [vmem:[%s4611_s3 + $0x1f4] ss:$72 sps:$4 sm:$0xff]  }
 0x81c   :  { %3319 = vrcp.f32 %v2252_v43 }
 0x825   :  { %v3316_v32 = vpop.eup %3315 }
 0x826   :  { %v2256_v16 = vmul.f32 %v3316_v32, %v3312_v54  ;;  %v3222_v54 = vld [vmem:[%s4611_s3 + $0x284] ss:$72 sps:$4 sm:$0xff]  }
 0x827   :  { %v3318_v9 = vpop.eup %3317  ;;  %v3224_v32 = vld [vmem:[%s4611_s3 + $0x164] ss:$72 sps:$4 sm:$0xff]  }
 0x828   :  { %v2255_v8 = vmul.f32 %v3318_v9, %v4430_v37 }
 0x829   :  { %v3320_v40 = vpop.eup %3319 }
 0x82a   :  { %v4476_v17 = vadd.f32 %v2256_v16, %v2255_v8  ;;  %v4639_v16 = vld [vmem:[#allocation4_spill] sm:$0xff] }
 0x82b   :  { %v1798_v9 = vadd.f32 %v4639_v16, %v4404_v30 }
 0x82c   :  { %3321 = vtanh.f32 %v4476_v17 }
 0x839   :  { %v3322_v41 = vpop.eup %3321 }
 0x83a   :  { %v2259_v4 = vmul.f32 %v3322_v41, %v3320_v40 }
 0x83c   :  { %v2264_v50 = vpack.c.bf16 %v2259_v4, %v2259_v4 }
 0x83e   :  { %2298 = vmatmul.mubr.bf16.vlgmr.msra.gmra.mxu1 %v2264_v50  ;;  %2339 = vmatmul.mubr.bf16.vlgmr.msra.gmra.mxu0 %v2264_v50 }
 0x83f   :  { %2381 = vmatpush1.bf16.msra.mxu1 %v4158_v13  ;;  %2422 = vmatpush1.bf16.msra.mxu0 %v4163_v25  ;;  %v1794_v13 = vadd.f32 %v4394_v6, %v4404_v30 }
 0x840   :  { %2382 = vmatprep.subr.bf16.mxu1 %v4172_v22  ;;  %2423 = vmatprep.subr.bf16.mxu0 %v4177_v24  ;;  %v1796_v24 = vadd.f32 %v4398_v10, %v4412_v36 }
 0x841   :  { %2412 = vmatprep.mubr.bf16.mxu1 %v4625_v27  ;;  %2453 = vmatprep.mubr.bf16.mxu0 %v4625_v27  ;;  %v4637_v27 = vmov 0.0  }
 0x843   :  { %2383 = vmatpush1.bf16.msra.mxu1 %v4182_v26  ;;  %2424 = vmatpush1.bf16.msra.mxu0 %v4187_v29 }
 0x844   :  { %2384 = vmatprep.subr.bf16.mxu1 %v4192_v31  ;;  %2425 = vmatprep.subr.bf16.mxu0 %v4199_v33 }
 0x847   :  { %2385 = vmatpush1.bf16.msra.mxu1 %v4206_v35  ;;  %2426 = vmatpush1.bf16.msra.mxu0 %v4211_v45 }
 0x848   :  { %2386 = vmatprep.subr.bf16.mxu1 %v4218_v46  ;;  %2427 = vmatprep.subr.bf16.mxu0 %v4223_v47 }
 0x84b   :  { %2387 = vmatpush1.bf16.msra.mxu1 %v4230_v48  ;;  %2428 = vmatpush1.bf16.msra.mxu0 %v4235_v49 }
 0x84c   :  { %2388 = vmatprep.subr.bf16.mxu1 %v4242_v51  ;;  %2429 = vmatprep.subr.bf16.mxu0 %v4247_v53  ;;  %v1849_v51 = vadd.f32 %v4400_v42, %v4422_v34 }
 0x84f   :  { %2389 = vmatpush1.bf16.msra.mxu1 %v4254_v56  ;;  %2430 = vmatpush1.bf16.msra.mxu0 %v4259_v39  ;;  %v4638_v56 = vld [vmem:[#allocation5_spill] sm:$0xff] }
 0x850   :  { %2390 = vmatprep.subr.bf16.mxu1 %v4266_v58  ;;  %2431 = vmatprep.subr.bf16.mxu0 %v4271_v59  ;;  %v1847_v39 = vadd.f32 %v4638_v56, %v4427_v52 }
 0x853   :  { %2391 = vmatpush1.bf16.msra.mxu1 %v4278_v60  ;;  %2432 = vmatpush1.bf16.msra.mxu0 %v4283_v61 }
 0x854   :  { %2392 = vmatprep.subr.bf16.mxu1 %v4292_v62  ;;  %2433 = vmatprep.subr.bf16.mxu0 %v4297_v63 }
 0x857   :  { %2393 = vmatpush1.bf16.msra.mxu1 %v4302_v28  ;;  %2434 = vmatpush1.bf16.msra.mxu0 %v4307_v7 }
 0x858   :  { %2394 = vmatprep.subr.bf16.mxu1 %v4312_v0  ;;  %2435 = vmatprep.subr.bf16.mxu0 %v4319_v21 }
 0x85b   :  { %2395 = vmatpush1.bf16.msra.mxu1 %v4326_v12  ;;  %2436 = vmatpush1.bf16.msra.mxu0 %v4331_v11 }
 0x85c   :  { %2939 = vmatprep.subr.bf16.mxu1 %v4637_v27  ;;  %2959 = vmatprep.subr.bf16.mxu0 %v4637_v27 }
 0x8fe   :  { %v2299_v25 = vpop.f32.mrf.mxu1  ;;  %v2340_v22 = vpop.f32.mrf.mxu0 }
 0x8ff   :  { %v2347_v26 = vadd.f32 %v2299_v25, %v1794_v13  ;;  %v2349_v58 = vadd.f32 %v2340_v22, %v1847_v39 }
 0x900   :  { %v2301_v29 = vpop.f32.mrf.mxu1  ;;  %v2342_v31 = vpop.f32.mrf.mxu0 }
 0x901   :  { %v2867_v33 = vmul.f32 -1.442695, %v2347_v26  ;;  %v2348_v35 = vadd.f32 %v2301_v29, %v1796_v24  ;;  %v2350_v53 = vadd.f32 %v2342_v31, %v1849_v51 }
 0x902   :  { %v2303_v45 = vpop.f32.mrf.mxu1  ;;  %v2344_v46 = vpop.f32.mrf.mxu0 }
 0x903   :  { %3323 = vpow2.f32 %v2867_v33  ;;  %v2868_v47 = vmul.f32 -1.442695, %v2348_v35  ;;  %v2869_v59 = vmul.f32 -1.442695, %v2350_v53  ;;  %v4641_v33 = vld [vmem:[#allocation8_spill] sm:$0xff]  ;;  %v4642_v45 = vld [vmem:[#allocation6_spill] sm:$0xff] }
 0x904   :  { %v2304_v48 = vpop.f32.mrf.mxu1  ;;  %v2345_v49 = vpop.f32.mrf.mxu0  ;;  %v1853_v30 = vadd.f32 %v4641_v33, %v4422_v34  ;;  %v1851_v46 = vadd.f32 %v4642_v45, %v4427_v52 }
 0x905   :  { %3325 = vpow2.f32 %v2868_v47 }
 0x906   :  { %3327 = vtanh.f32 %v2349_v58 }
 0x907   :  { %3329 = vpow2.f32 %v2869_v59 }
 0x910   :  { %v3324_v60 = vpop.eup %3323 }
 0x911   :  { %v2354_v61 = vadd.f32 1.0, %v3324_v60 }
 0x912   :  { %v3326_v62 = vpop.eup %3325 }
 0x913   :  { %3331 = vrcp.f32 %v2354_v61  ;;  %v2360_v63 = vadd.f32 1.0, %v3326_v62  ;;  %v3328_v28 = vpop.eup %3327 }
 0x914   :  { %v3330_v7 = vpop.eup %3329 }
 0x915   :  { %3333 = vrcp.f32 %v2360_v63  ;;  %v2367_v11 = vadd.f32 1.0, %v3330_v7 }
 0x917   :  { %3335 = vrcp.f32 %v2367_v11 }
 0x920   :  { %v3332_v0 = vpop.eup %3331 }
 0x921   :  { %v2371_v21 = vmul.f32 %v3332_v0, %v3328_v28  ;;  %v3225_v0 = vld [vmem:[%s4611_s3 + $0xd4] ss:$72 sps:$4 sm:$0xff]  }
 0x922   :  { %v3334_v12 = vpop.eup %3333 }
 0x923   :  { %v2370_v6 = vmul.f32 %v3334_v12, %v4476_v17  ;;  %v4640_v17 = vld [vmem:[#allocation7_spill] sm:$0xff]  ;;  %v2873_v12 = vld [vmem:[%s4610_s4 + $0x9] ss:$0 sm:$0xff] }
 0x924   :  { %v3336_v42 = vpop.eup %3335  ;;  %v1800_v40 = vadd.f32 %v4640_v17, %v4412_v36 }
 0x925   :  { %v4522_v10 = vadd.f32 %v2371_v21, %v2370_v6  ;;  %v3226_v21 = vld [vmem:[%s4611_s3 + $0x44] ss:$72 sps:$4 sm:$0xff]  }
 0x927   :  { %3337 = vtanh.f32 %v4522_v10 }
 0x934   :  { %v3338_v37 = vpop.eup %3337 }
 0x935   :  { %v2374_v38 = vmul.f32 %v3338_v37, %v3336_v42 }
 0x937   :  { %v2379_v55 = vpack.c.bf16 %v2374_v38, %v2374_v38 }
 0x939   :  { %2413 = vmatmul.mubr.bf16.vlgmr.msra.gmra.mxu1 %v2379_v55  ;;  %2454 = vmatmul.mubr.bf16.vlgmr.msra.gmra.mxu0 %v2379_v55 }
 0x93a   :  { %2940 = vmatpush3.bf16.msra.mxu1 %v3211_v18  ;;  %2955 = vmatprep.mubr.msk.bf16.mxu1 %vm3360_vm6, %v4637_v27 }
 0x93b   :  { %2941 = vmatprep.subr.bf16.mxu1 %v4637_v27  ;;  %2975 = vmatprep.mubr.msk.bf16.mxu0 %vm3360_vm6, %v4637_v27 }
 0x93c   :  { %2960 = vmatpush3.bf16.msra.mxu0 %v3219_v57 }
 0x93d   :  { %2961 = vmatprep.subr.bf16.mxu0 %v4637_v27 }
 0x93e   :  { %2942 = vmatpush3.bf16.msra.mxu1 %v3212_v3 }
 0x93f   :  { %2943 = vmatprep.subr.bf16.mxu1 %v4637_v27 }
 0x940   :  { %2962 = vmatpush3.bf16.msra.mxu0 %v3220_v5 }
 0x941   :  { %2963 = vmatprep.subr.bf16.mxu0 %v4637_v27 }
 0x942   :  { %2944 = vmatpush3.bf16.msra.mxu1 %v3213_v20 }
 0x943   :  { %2945 = vmatprep.subr.bf16.mxu1 %v4637_v27 }
 0x944   :  { %2964 = vmatpush3.bf16.msra.mxu0 %v3221_v44 }
 0x945   :  { %2965 = vmatprep.subr.bf16.mxu0 %v4637_v27 }
 0x946   :  { %2946 = vmatpush3.bf16.msra.mxu1 %v3214_v2 }
 0x947   :  { %2947 = vmatprep.subr.bf16.mxu1 %v4637_v27 }
 0x948   :  { %2966 = vmatpush3.bf16.msra.mxu0 %v3222_v54 }
 0x949   :  { %2967 = vmatprep.subr.bf16.mxu0 %v4637_v27 }
 0x94a   :  { %2948 = vmatpush3.bf16.msra.mxu1 %v3215_v19 }
 0x94b   :  { %2949 = vmatprep.subr.bf16.mxu1 %v4637_v27 }
 0x94c   :  { %2968 = vmatpush3.bf16.msra.mxu0 %v3223_v14 }
 0x94d   :  { %2969 = vmatprep.subr.bf16.mxu0 %v4637_v27 }
 0x94e   :  { %2950 = vmatpush3.bf16.msra.mxu1 %v3216_v15 }
 0x94f   :  { %2951 = vmatprep.subr.bf16.mxu1 %v4637_v27 }
 0x950   :  { %2970 = vmatpush3.bf16.msra.mxu0 %v3224_v32 }
 0x951   :  { %2971 = vmatprep.subr.bf16.mxu0 %v4637_v27 }
 0x952   :  { %2952 = vmatpush3.bf16.msra.mxu1 %v3217_v1 }
 0x953   :  { %2953 = vmatprep.subr.bf16.mxu1 %v4637_v27 }
 0x954   :  { %2972 = vmatpush3.bf16.msra.mxu0 %v3225_v0 }
 0x955   :  { %2973 = vmatprep.subr.bf16.mxu0 %v4637_v27  ;;  %v2882_v27 = vld [vmem:[%s4610_s4 + $0xa] ss:$0 sm:$0xff] }
 0x956   :  { %2954 = vmatpush3.bf16.msra.mxu1 %v3218_v23 }
 0x958   :  { %2974 = vmatpush3.bf16.msra.mxu0 %v3226_v21 }
 0x9f9   :  { %v2414_v43 = vpop.f32.mrf.mxu1  ;;  %v2455_v8 = vpop.f32.mrf.mxu0 }
 0x9fa   :  { %v2462_v41 = vadd.f32 %v2414_v43, %v1798_v9  ;;  %v2464_v36 = vadd.f32 %v2455_v8, %v1851_v46 }
 0x9fb   :  { %v2416_v4 = vpop.f32.mrf.mxu1  ;;  %v2457_v50 = vpop.f32.mrf.mxu0 }
 0x9fc   :  { %v2870_v13 = vmul.f32 -1.442695, %v2462_v41  ;;  %v2463_v25 = vadd.f32 %v2416_v4, %v1800_v40  ;;  %v2465_v35 = vadd.f32 %v2457_v50, %v1853_v30 }
 0x9fd   :  { %v2418_v22 = vpop.f32.mrf.mxu1  ;;  %v2459_v24 = vpop.f32.mrf.mxu0 }
 0x9fe   :  { %3339 = vpow2.f32 %v2870_v13  ;;  %v2871_v26 = vmul.f32 -1.442695, %v2463_v25  ;;  %v2872_v47 = vmul.f32 -1.442695, %v2465_v35 }
 0x9ff   :  { %v2419_v29 = vpop.f32.mrf.mxu1  ;;  %v2460_v31 = vpop.f32.mrf.mxu0 }
 0xa00   :  { %3341 = vpow2.f32 %v2871_v26 }
 0xa01   :  { %3343 = vtanh.f32 %v2464_v36 }
 0xa02   :  { %3345 = vpow2.f32 %v2872_v47 }
 0xa0b   :  { %v3340_v48 = vpop.eup %3339 }
 0xa0c   :  { %v2469_v49 = vadd.f32 1.0, %v3340_v48 }
 0xa0d   :  { %v3342_v51 = vpop.eup %3341 }
 0xa0e   :  { %3347 = vrcp.f32 %v2469_v49  ;;  %v2475_v53 = vadd.f32 1.0, %v3342_v51  ;;  %v3344_v56 = vpop.eup %3343 }
 0xa0f   :  { %v3346_v39 = vpop.eup %3345 }
 0xa10   :  { %3349 = vrcp.f32 %v2475_v53  ;;  %v2482_v34 = vadd.f32 1.0, %v3346_v39 }
 0xa12   :  { %3351 = vrcp.f32 %v2482_v34 }
 0xa1b   :  { %v3348_v58 = vpop.eup %3347 }
 0xa1c   :  { %v2486_v59 = vmul.f32 %v3348_v58, %v3344_v56 }
 0xa1d   :  { %v3350_v60 = vpop.eup %3349 }
 0xa1e   :  { %v2485_v61 = vmul.f32 %v3350_v60, %v4522_v10 }
 0xa1f   :  { %v3352_v52 = vpop.eup %3351 }
 0xa20   :  { %v2487_v62 = vadd.f32 %v2486_v59, %v2485_v61 }
 0xa22   :  { %3353 = vtanh.f32 %v2487_v62 }
 0xa2f   :  { %v3354_v63 = vpop.eup %3353 }
 0xa30   :  { %v2489_v28 = vmul.f32 %v3354_v63, %v3352_v52 }
 0xa32   :  { %v2490_v7 = vpack.c.bf16 %v2489_v28, %v2489_v28 }
 0xa34   :  { %2956 = vmatmul.mubr.bf16.vlgmr.msra.gmra.mxu1 %v2490_v7 }
 0xaf4   :  { %v2579_v11 = vpop.f32.mrf.mxu1 }
 0xaf5   :  { %v2580_v6 = vadd.f32 %v2873_v12, %v2579_v11 }
 0xaf6   :  { %v2957_v10 = vpop.f32.mrf.mxu1 }
 0xaf7   :  { %v2585_v42 = vmax.f32 %v2580_v6, 0.0 }
 0xaf8   :  { %v2582_v37 = vpop.f32.mrf.mxu1 }
 0xaf9   :  { %v2586_v38 = vpack.c.bf16 %v2585_v42, %v2585_v42 }
 0xafa   :  { %v2958_v55 = vpop.f32.mrf.mxu1 }
 0xafb   :  { %2976 = vmatmul.mubr.bf16.vlgmr.msra.gmra.mxu0 %v2586_v38 }
 0xbbb   :  { %v2675_v18 = vpop.f32.mrf.mxu0 }
 0xbbc   :  { %v2676_v3 = vadd.f32 %v2882_v27, %v2675_v18 }
 0xbbd   :  { %v2977_v20 = vpop.f32.mrf.mxu0 }
 0xbbe   :  { %2681 = vst [vmem:[%s4612_s5] sm:$0xff] %v2676_v3 }
 0xbbf   :  { %v2678_v2 = vpop.f32.mrf.mxu0 }
 0xbc1   :  { %v2978_v19 = vpop.f32.mrf.mxu0 }

</bundles_post_ra>
